<compile_context>
chip_gen: v6e
topology: v6e:2x2x1
jax: 0.10.0
libtpu: 0.0.40
codegen_flags: <defaults>
</compile_context>

<pallas_src>
import functools
import math

import jax
import jax.numpy as jnp
from jax.experimental import pallas as pl
from jax.experimental.pallas import tpu as pltpu


def _round_up(x, m):
    return ((x + m - 1) // m) * m


def _pick_hw_tile(hw, kkc_pad):
    """Largest lane-aligned (multiple-of-128) tile dividing HW whose
    double-buffered f32 patch block stays within ~8 MiB (safe for the
    16/32 MiB scoped-VMEM defaults on v5e / v6e / v7x)."""
    budget = 8 * 1024 * 1024
    divs = [t for t in (1024, 512, 256, 128) if hw % t == 0]
    if not divs:
        return hw                       # small / ragged HW: single full tile
    for t in divs:                      # descending
        if 2 * kkc_pad * t * 4 <= budget:
            return t
    return divs[-1]


def _sigmoid(x):
    # 0.5 * tanh(0.5 x) + 0.5 : one EUP push (tanh) + cheap VALU fixups,
    # instead of exp + full-precision divide.
    return 0.5 * jnp.tanh(0.5 * x) + 0.5


def convlstm_kernel(patch_ref, w_ref, b_ref, c_ref, h_out_ref, c_out_ref):
    # patch_ref: (1, KKC_pad, T)   im2col patches of cat([x, h_cur]) (chan-major)
    # w_ref:     (4*HID, KKC_pad)  fused gate weights (i, f, o, g row blocks)
    # b_ref:     (4*HID, 1)        fused gate bias
    # c_ref:     (1, HID, T)       current cell state (lane dim = spatial tile)
    hid = c_ref.shape[1]

    p = patch_ref[0]                    # (KKC_pad, T)
    w = w_ref[...]                      # (4*HID, KKC_pad)

    # Single MXU pass for all four gates, lane-dense (last dim = T).
    gates = jnp.dot(w, p, preferred_element_type=jnp.float32) + b_ref[...]

    i = _sigmoid(gates[0 * hid:1 * hid])
    f = _sigmoid(gates[1 * hid:2 * hid])
    o = _sigmoid(gates[2 * hid:3 * hid])
    g = jnp.tanh(gates[3 * hid:4 * hid])

    c_cur = c_ref[0]                    # (HID, T)
    c_next = f * c_cur + i * g
    h_next = o * jnp.tanh(c_next)

    h_out_ref[0] = h_next.astype(h_out_ref.dtype)
    c_out_ref[0] = c_next.astype(c_out_ref.dtype)


def prep_gate_weights(weight, bias, kernel_size, input_channels, hidden_channels):
    """PyTorch Conv2d OIHW weight -> fused im2col gate matrix (4*HID, KKC_pad)."""
    K = kernel_size
    c_tot = input_channels + hidden_channels
    kkc = K * K * c_tot
    kkc_pad = _round_up(kkc, 128)
    # (4*HID, C_tot, K, K) -> (4*HID, K, K, C_tot) -> (4*HID, KKC)
    # column index = (ky*K + kx) * C_tot + c, matching the patch layout below.
    w_t = jnp.transpose(weight, (0, 2, 3, 1)).reshape(4 * hidden_channels, kkc)
    w_t = jnp.pad(w_t, ((0, 0), (0, kkc_pad - kkc)))
    b_col = bias.reshape(4 * hidden_channels, 1)
    return w_t.astype(jnp.float32), b_col.astype(jnp.float32)


def conv_lstm_cell_pallas(x, h_cur, c_cur, w_gates, b_gates, kernel_size,
                          padding, hidden_channels):
    """One ConvLSTMCell step.  x/h_cur/c_cur are NCHW; returns NCHW (h, c)."""
    B, C_in, H, W = x.shape
    K = kernel_size
    P = padding
    HID = hidden_channels
    C_tot = C_in + HID
    HW = H * W
    KKC = K * K * C_tot
    KKC_pad = w_gates.shape[1]

    # ---- glue (pure pads/slices/reshapes, no transposes): chan-major im2col
    combined = jnp.concatenate([x, h_cur], axis=1)            # (B, C_tot, H, W)
    padded = jnp.pad(combined, ((0, 0), (0, 0), (P, P), (P, P)))
    taps = [padded[:, :, ky:ky + H, kx:kx + W]
            for ky in range(K) for kx in range(K)]            # (B, C_tot, H, W)
    patches = jnp.stack(taps, axis=1).reshape(B, KKC, HW)     # (B, KKC, HW)
    patches = jnp.pad(patches, ((0, 0), (0, KKC_pad - KKC), (0, 0)))

    c_flat = c_cur.reshape(B, HID, HW)                        # free reshape

    T = _pick_hw_tile(HW, KKC_pad)
    grid = (B, HW // T)

    grid_spec = pltpu.PrefetchScalarGridSpec(
        num_scalar_prefetch=0,
        grid=grid,
        in_specs=[
            pl.BlockSpec((1, KKC_pad, T), lambda b, t: (b, 0, t)),
            # Weight / bias: constant index_map -> fetched once, kept resident.
            pl.BlockSpec((4 * HID, KKC_pad), lambda b, t: (0, 0)),
            pl.BlockSpec((4 * HID, 1), lambda b, t: (0, 0)),
            pl.BlockSpec((1, HID, T), lambda b, t: (b, 0, t)),
        ],
        out_specs=[
            pl.BlockSpec((1, HID, T), lambda b, t: (b, 0, t)),
            pl.BlockSpec((1, HID, T), lambda b, t: (b, 0, t)),
        ],
    )

    h_next, c_next = pl.pallas_call(
        convlstm_kernel,
        out_shape=[
            jax.ShapeDtypeStruct((B, HID, HW), jnp.float32),
            jax.ShapeDtypeStruct((B, HID, HW), jnp.float32),
        ],
        grid_spec=grid_spec,
        compiler_params=pltpu.CompilerParams(
            dimension_semantics=("parallel", "parallel")),
    )(patches, w_gates, b_gates, c_flat)

    return h_next.reshape(B, HID, H, W), c_next.reshape(B, HID, H, W)


def conv_lstm_forward(x_seq, weight, bias, kernel_size, padding, hidden_channels):
    """ConvLSTM.forward: x_seq (B, T, C, H, W) -> final hidden state h."""
    B, seq_len, C_in, H, W = x_seq.shape
    HID = hidden_channels
    w_gates, b_gates = prep_gate_weights(weight, bias, kernel_size, C_in, HID)
    h = jnp.zeros((B, HID, H, W), jnp.float32)
    c = jnp.zeros((B, HID, H, W), jnp.float32)
    for t in range(seq_len):
        h, c = conv_lstm_cell_pallas(x_seq[:, t], h, c, w_gates, b_gates,
                                     kernel_size, padding, HID)
    return h


# ---------------------------- pure-JAX reference ----------------------------
def conv_lstm_cell_reference(x, h_cur, c_cur, weight, bias, padding,
                             hidden_channels):
    combined = jnp.concatenate([x, h_cur], axis=1)
    conv_out = jax.lax.conv_general_dilated(
        combined, weight,
        window_strides=(1, 1),
        padding=[(padding, padding), (padding, padding)],
        dimension_numbers=("NCHW", "OIHW", "NCHW"),
    ) + bias.reshape(1, -1, 1, 1)
    HID = hidden_channels
    i = jax.nn.sigmoid(conv_out[:, 0 * HID:1 * HID])
    f = jax.nn.sigmoid(conv_out[:, 1 * HID:2 * HID])
    o = jax.nn.sigmoid(conv_out[:, 2 * HID:3 * HID])
    g = jnp.tanh(conv_out[:, 3 * HID:4 * HID])
    c_next = f * c_cur + i * g
    h_next = o * jnp.tanh(c_next)
    return h_next, c_next


def conv_lstm_forward_reference(x_seq, weight, bias, padding, hidden_channels):
    B, seq_len, C_in, H, W = x_seq.shape
    HID = hidden_channels
    h = jnp.zeros((B, HID, H, W), jnp.float32)
    c = jnp.zeros((B, HID, H, W), jnp.float32)
    for t in range(seq_len):
        h, c = conv_lstm_cell_reference(x_seq[:, t], h, c, weight, bias,
                                        padding, HID)
    return h


if __name__ == "__main__":
    B, SEQ, C_IN, HID, H, W, K, P = 2, 8, 4, 32, 16, 16, 3, 1

    key = jax.random.PRNGKey(0)
    k_w, k_b, k_x = jax.random.split(key, 3)

    # Deterministic Conv2d-style init (uniform +/- 1/sqrt(fan_in)).
    fan_in = (C_IN + HID) * K * K
    bound = 1.0 / math.sqrt(fan_in)
    weight = jax.random.uniform(k_w, (4 * HID, C_IN + HID, K, K),
                                jnp.float32, -bound, bound)
    bias = jax.random.uniform(k_b, (4 * HID,), jnp.float32, -bound, bound)
    x_seq = jax.random.normal(k_x, (B, SEQ, C_IN, H, W), jnp.float32)

    run = jax.jit(functools.partial(conv_lstm_forward, kernel_size=K,
                                    padding=P, hidden_channels=HID))
    h_out = run(x_seq, weight, bias)
    jax.block_until_ready(h_out)

    h_ref = conv_lstm_forward_reference(x_seq, weight, bias, P, HID)

    assert h_out.shape == (B, HID, H, W)
    assert jnp.allclose(h_out, h_ref, rtol=1e-3, atol=1e-3), float(
        jnp.max(jnp.abs(h_out - h_ref)))

    print("KERNEL_OK")
</pallas_src>

<mosaic_0001>
module attributes {stable_mosaic.version = 11 : i64} {
  func.func @convlstm_kernel(%arg0: i32, %arg1: i32, %arg2: memref<1x384x256xf32, #tpu.memory_space<vmem>>, %arg3: memref<128x384xf32, #tpu.memory_space<vmem>>, %arg4: memref<128x1xf32, #tpu.memory_space<vmem>>, %arg5: memref<1x32x256xf32, #tpu.memory_space<vmem>>, %arg6: memref<1x32x256xf32, #tpu.memory_space<vmem>>, %arg7: memref<1x32x256xf32, #tpu.memory_space<vmem>>) attributes {dimension_semantics = [#tpu.dimension_semantics<parallel>, #tpu.dimension_semantics<parallel>], iteration_bounds = array<i64: 2, 1>, scalar_prefetch = 0 : i64, scratch_operands = 0 : i64, tpu.core_type = #tpu.core_type<tc>, window_params = [{transform_indices = @transform_0, window_bounds = array<i64: 1, 384, 256>}, {pipeline_mode = #tpu.pipeline_mode<synchronous>, transform_indices = @transform_1, window_bounds = array<i64: 128, 384>}, {pipeline_mode = #tpu.pipeline_mode<synchronous>, transform_indices = @transform_2, window_bounds = array<i64: 128, 1>}, {transform_indices = @transform_3, window_bounds = array<i64: 1, 32, 256>}, {transform_indices = @transform_4, window_bounds = array<i64: 1, 32, 256>}, {transform_indices = @transform_5, window_bounds = array<i64: 1, 32, 256>}]} {
    %c0 = arith.constant 0 : index
    %c0_0 = arith.constant 0 : index
    %c0_1 = arith.constant 0 : index
    %0 = vector.load %arg2[%c0, %c0_0, %c0_1] : memref<1x384x256xf32, #tpu.memory_space<vmem>>, vector<1x384x256xf32>
    %1 = vector.shape_cast %0 : vector<1x384x256xf32> to vector<384x256xf32>
    %c0_2 = arith.constant 0 : index
    %c0_3 = arith.constant 0 : index
    %2 = vector.load %arg3[%c0_2, %c0_3] : memref<128x384xf32, #tpu.memory_space<vmem>>, vector<128x384xf32>
    %cst = arith.constant dense<0.000000e+00> : vector<128x256xf32>
    %3 = tpu.matmul %2, %1, %cst {dimension_numbers = #tpu.dot_dimension_numbers<[1], [0], [0], [1], [0, 0, 1, 1], [], []>} : vector<128x384xf32>, vector<384x256xf32>, vector<128x256xf32> -> vector<128x256xf32>
    %c0_4 = arith.constant 0 : index
    %c0_5 = arith.constant 0 : index
    %4 = vector.load %arg4[%c0_4, %c0_5] : memref<128x1xf32, #tpu.memory_space<vmem>>, vector<128x1xf32>
    %5 = vector.broadcast %4 : vector<128x1xf32> to vector<128x256xf32>
    %6 = arith.addf %3, %5 : vector<128x256xf32>
    %7 = vector.extract_strided_slice %6 {offsets = [0, 0], sizes = [32, 256], strides = [1, 1]} : vector<128x256xf32> to vector<32x256xf32>
    %cst_6 = arith.constant 5.000000e-01 : f32
    %8 = vector.broadcast %cst_6 : f32 to vector<32x256xf32>
    %9 = arith.mulf %8, %7 : vector<32x256xf32>
    %10 = math.tanh %9 : vector<32x256xf32>
    %cst_7 = arith.constant 5.000000e-01 : f32
    %11 = vector.broadcast %cst_7 : f32 to vector<32x256xf32>
    %12 = arith.mulf %11, %10 : vector<32x256xf32>
    %cst_8 = arith.constant 5.000000e-01 : f32
    %13 = vector.broadcast %cst_8 : f32 to vector<32x256xf32>
    %14 = arith.addf %12, %13 : vector<32x256xf32>
    %15 = vector.extract_strided_slice %6 {offsets = [32, 0], sizes = [32, 256], strides = [1, 1]} : vector<128x256xf32> to vector<32x256xf32>
    %cst_9 = arith.constant 5.000000e-01 : f32
    %16 = vector.broadcast %cst_9 : f32 to vector<32x256xf32>
    %17 = arith.mulf %16, %15 : vector<32x256xf32>
    %18 = math.tanh %17 : vector<32x256xf32>
    %cst_10 = arith.constant 5.000000e-01 : f32
    %19 = vector.broadcast %cst_10 : f32 to vector<32x256xf32>
    %20 = arith.mulf %19, %18 : vector<32x256xf32>
    %cst_11 = arith.constant 5.000000e-01 : f32
    %21 = vector.broadcast %cst_11 : f32 to vector<32x256xf32>
    %22 = arith.addf %20, %21 : vector<32x256xf32>
    %23 = vector.extract_strided_slice %6 {offsets = [64, 0], sizes = [32, 256], strides = [1, 1]} : vector<128x256xf32> to vector<32x256xf32>
    %cst_12 = arith.constant 5.000000e-01 : f32
    %24 = vector.broadcast %cst_12 : f32 to vector<32x256xf32>
    %25 = arith.mulf %24, %23 : vector<32x256xf32>
    %26 = math.tanh %25 : vector<32x256xf32>
    %cst_13 = arith.constant 5.000000e-01 : f32
    %27 = vector.broadcast %cst_13 : f32 to vector<32x256xf32>
    %28 = arith.mulf %27, %26 : vector<32x256xf32>
    %cst_14 = arith.constant 5.000000e-01 : f32
    %29 = vector.broadcast %cst_14 : f32 to vector<32x256xf32>
    %30 = arith.addf %28, %29 : vector<32x256xf32>
    %31 = vector.extract_strided_slice %6 {offsets = [96, 0], sizes = [32, 256], strides = [1, 1]} : vector<128x256xf32> to vector<32x256xf32>
    %32 = math.tanh %31 : vector<32x256xf32>
    %c0_15 = arith.constant 0 : index
    %c0_16 = arith.constant 0 : index
    %c0_17 = arith.constant 0 : index
    %33 = vector.load %arg5[%c0_15, %c0_16, %c0_17] : memref<1x32x256xf32, #tpu.memory_space<vmem>>, vector<1x32x256xf32>
    %34 = vector.shape_cast %33 : vector<1x32x256xf32> to vector<32x256xf32>
    %35 = arith.mulf %22, %34 : vector<32x256xf32>
    %36 = arith.mulf %14, %32 : vector<32x256xf32>
    %37 = arith.addf %35, %36 : vector<32x256xf32>
    %38 = math.tanh %37 : vector<32x256xf32>
    %39 = arith.mulf %30, %38 : vector<32x256xf32>
    %c0_18 = arith.constant 0 : index
    %c0_19 = arith.constant 0 : index
    %c0_20 = arith.constant 0 : index
    %40 = vector.load %arg6[%c0_18, %c0_19, %c0_20] : memref<1x32x256xf32, #tpu.memory_space<vmem>>, vector<1x32x256xf32>
    %41 = vector.shape_cast %40 : vector<1x32x256xf32> to vector<32x256xf32>
    %42 = vector.shape_cast %39 : vector<32x256xf32> to vector<1x32x256xf32>
    tpu.vector_store %arg6[%c0_18, %c0_19, %c0_20], %42 {strides = array<i32>} : memref<1x32x256xf32, #tpu.memory_space<vmem>>, vector<1x32x256xf32>,
    %c0_21 = arith.constant 0 : index
    %c0_22 = arith.constant 0 : index
    %c0_23 = arith.constant 0 : index
    %43 = vector.load %arg7[%c0_21, %c0_22, %c0_23] : memref<1x32x256xf32, #tpu.memory_space<vmem>>, vector<1x32x256xf32>
    %44 = vector.shape_cast %43 : vector<1x32x256xf32> to vector<32x256xf32>
    %45 = vector.shape_cast %37 : vector<32x256xf32> to vector<1x32x256xf32>
    tpu.vector_store %arg7[%c0_21, %c0_22, %c0_23], %45 {strides = array<i32>} : memref<1x32x256xf32, #tpu.memory_space<vmem>>, vector<1x32x256xf32>,
    return
  }
  func.func @transform_0(%arg0: i32, %arg1: i32) -> (i32, i32, i32) {
    %c0_i32 = arith.constant 0 : i32
    %c0_i32_0 = arith.constant 0 : i32
    return %arg0, %c0_i32, %arg1 : i32, i32, i32
  }
  func.func @transform_1(%arg0: i32, %arg1: i32) -> (i32, i32) {
    %c0_i32 = arith.constant 0 : i32
    %c0_i32_0 = arith.constant 0 : i32
    %c0_i32_1 = arith.constant 0 : i32
    return %c0_i32, %c0_i32_0 : i32, i32
  }
  func.func @transform_2(%arg0: i32, %arg1: i32) -> (i32, i32) {
    %c0_i32 = arith.constant 0 : i32
    %c0_i32_0 = arith.constant 0 : i32
    %c0_i32_1 = arith.constant 0 : i32
    return %c0_i32, %c0_i32_0 : i32, i32
  }
  func.func @transform_3(%arg0: i32, %arg1: i32) -> (i32, i32, i32) {
    %c0_i32 = arith.constant 0 : i32
    %c0_i32_0 = arith.constant 0 : i32
    return %arg0, %c0_i32, %arg1 : i32, i32, i32
  }
  func.func @transform_4(%arg0: i32, %arg1: i32) -> (i32, i32, i32) {
    %c0_i32 = arith.constant 0 : i32
    %c0_i32_0 = arith.constant 0 : i32
    return %arg0, %c0_i32, %arg1 : i32, i32, i32
  }
  func.func @transform_5(%arg0: i32, %arg1: i32) -> (i32, i32, i32) {
    %c0_i32 = arith.constant 0 : i32
    %c0_i32_0 = arith.constant 0 : i32
    return %arg0, %c0_i32, %arg1 : i32, i32, i32
  }
}

module attributes {stable_mosaic.version = 11 : i64} {
  func.func @convlstm_kernel(%arg0: i32, %arg1: i32, %arg2: memref<1x384x256xf32, #tpu.memory_space<vmem>>, %arg3: memref<128x384xf32, #tpu.memory_space<vmem>>, %arg4: memref<128x1xf32, #tpu.memory_space<vmem>>, %arg5: memref<1x32x256xf32, #tpu.memory_space<vmem>>, %arg6: memref<1x32x256xf32, #tpu.memory_space<vmem>>, %arg7: memref<1x32x256xf32, #tpu.memory_space<vmem>>) attributes {dimension_semantics = [#tpu.dimension_semantics<parallel>, #tpu.dimension_semantics<parallel>], iteration_bounds = array<i64: 2, 1>, scalar_prefetch = 0 : i64, scratch_operands = 0 : i64, tpu.core_type = #tpu.core_type<tc>, window_params = [{transform_indices = @transform_0, window_bounds = array<i64: 1, 384, 256>}, {pipeline_mode = #tpu.pipeline_mode<synchronous>, transform_indices = @transform_1, window_bounds = array<i64: 128, 384>}, {pipeline_mode = #tpu.pipeline_mode<synchronous>, transform_indices = @transform_2, window_bounds = array<i64: 128, 1>}, {transform_indices = @transform_3, window_bounds = array<i64: 1, 32, 256>}, {transform_indices = @transform_4, window_bounds = array<i64: 1, 32, 256>}, {transform_indices = @transform_5, window_bounds = array<i64: 1, 32, 256>}]} {
    %c0 = arith.constant 0 : index
    %c0_0 = arith.constant 0 : index
    %c0_1 = arith.constant 0 : index
    %0 = vector.load %arg2[%c0, %c0_0, %c0_1] : memref<1x384x256xf32, #tpu.memory_space<vmem>>, vector<1x384x256xf32>
    %1 = vector.shape_cast %0 : vector<1x384x256xf32> to vector<384x256xf32>
    %c0_2 = arith.constant 0 : index
    %c0_3 = arith.constant 0 : index
    %2 = vector.load %arg3[%c0_2, %c0_3] : memref<128x384xf32, #tpu.memory_space<vmem>>, vector<128x384xf32>
    %cst = arith.constant dense<0.000000e+00> : vector<128x256xf32>
    %3 = tpu.matmul %2, %1, %cst {dimension_numbers = #tpu.dot_dimension_numbers<[1], [0], [0], [1], [0, 0, 1, 1], [], []>} : vector<128x384xf32>, vector<384x256xf32>, vector<128x256xf32> -> vector<128x256xf32>
    %c0_4 = arith.constant 0 : index
    %c0_5 = arith.constant 0 : index
    %4 = vector.load %arg4[%c0_4, %c0_5] : memref<128x1xf32, #tpu.memory_space<vmem>>, vector<128x1xf32>
    %5 = vector.broadcast %4 : vector<128x1xf32> to vector<128x256xf32>
    %6 = arith.addf %3, %5 : vector<128x256xf32>
    %7 = vector.extract_strided_slice %6 {offsets = [0, 0], sizes = [32, 256], strides = [1, 1]} : vector<128x256xf32> to vector<32x256xf32>
    %cst_6 = arith.constant 5.000000e-01 : f32
    %8 = vector.broadcast %cst_6 : f32 to vector<32x256xf32>
    %9 = arith.mulf %8, %7 : vector<32x256xf32>
    %10 = math.tanh %9 : vector<32x256xf32>
    %cst_7 = arith.constant 5.000000e-01 : f32
    %11 = vector.broadcast %cst_7 : f32 to vector<32x256xf32>
    %12 = arith.mulf %11, %10 : vector<32x256xf32>
    %cst_8 = arith.constant 5.000000e-01 : f32
    %13 = vector.broadcast %cst_8 : f32 to vector<32x256xf32>
    %14 = arith.addf %12, %13 : vector<32x256xf32>
    %15 = vector.extract_strided_slice %6 {offsets = [32, 0], sizes = [32, 256], strides = [1, 1]} : vector<128x256xf32> to vector<32x256xf32>
    %cst_9 = arith.constant 5.000000e-01 : f32
    %16 = vector.broadcast %cst_9 : f32 to vector<32x256xf32>
    %17 = arith.mulf %16, %15 : vector<32x256xf32>
    %18 = math.tanh %17 : vector<32x256xf32>
    %cst_10 = arith.constant 5.000000e-01 : f32
    %19 = vector.broadcast %cst_10 : f32 to vector<32x256xf32>
    %20 = arith.mulf %19, %18 : vector<32x256xf32>
    %cst_11 = arith.constant 5.000000e-01 : f32
    %21 = vector.broadcast %cst_11 : f32 to vector<32x256xf32>
    %22 = arith.addf %20, %21 : vector<32x256xf32>
    %23 = vector.extract_strided_slice %6 {offsets = [64, 0], sizes = [32, 256], strides = [1, 1]} : vector<128x256xf32> to vector<32x256xf32>
    %cst_12 = arith.constant 5.000000e-01 : f32
    %24 = vector.broadcast %cst_12 : f32 to vector<32x256xf32>
    %25 = arith.mulf %24, %23 : vector<32x256xf32>
    %26 = math.tanh %25 : vector<32x256xf32>
    %cst_13 = arith.constant 5.000000e-01 : f32
    %27 = vector.broadcast %cst_13 : f32 to vector<32x256xf32>
    %28 = arith.mulf %27, %26 : vector<32x256xf32>
    %cst_14 = arith.constant 5.000000e-01 : f32
    %29 = vector.broadcast %cst_14 : f32 to vector<32x256xf32>
    %30 = arith.addf %28, %29 : vector<32x256xf32>
    %31 = vector.extract_strided_slice %6 {offsets = [96, 0], sizes = [32, 256], strides = [1, 1]} : vector<128x256xf32> to vector<32x256xf32>
    %32 = math.tanh %31 : vector<32x256xf32>
    %c0_15 = arith.constant 0 : index
    %c0_16 = arith.constant 0 : index
    %c0_17 = arith.constant 0 : index
    %33 = vector.load %arg5[%c0_15, %c0_16, %c0_17] : memref<1x32x256xf32, #tpu.memory_space<vmem>>, vector<1x32x256xf32>
    %34 = vector.shape_cast %33 : vector<1x32x256xf32> to vector<32x256xf32>
    %35 = arith.mulf %22, %34 : vector<32x256xf32>
    %36 = arith.mulf %14, %32 : vector<32x256xf32>
    %37 = arith.addf %35, %36 : vector<32x256xf32>
    %38 = math.tanh %37 : vector<32x256xf32>
    %39 = arith.mulf %30, %38 : vector<32x256xf32>
    %c0_18 = arith.constant 0 : index
    %c0_19 = arith.constant 0 : index
    %c0_20 = arith.constant 0 : index
    %40 = vector.load %arg6[%c0_18, %c0_19, %c0_20] : memref<1x32x256xf32, #tpu.memory_space<vmem>>, vector<1x32x256xf32>
    %41 = vector.shape_cast %40 : vector<1x32x256xf32> to vector<32x256xf32>
    %42 = vector.shape_cast %39 : vector<32x256xf32> to vector<1x32x256xf32>
    tpu.vector_store %arg6[%c0_18, %c0_19, %c0_20], %42 {strides = array<i32>} : memref<1x32x256xf32, #tpu.memory_space<vmem>>, vector<1x32x256xf32>,
    %c0_21 = arith.constant 0 : index
    %c0_22 = arith.constant 0 : index
    %c0_23 = arith.constant 0 : index
    %43 = vector.load %arg7[%c0_21, %c0_22, %c0_23] : memref<1x32x256xf32, #tpu.memory_space<vmem>>, vector<1x32x256xf32>
    %44 = vector.shape_cast %43 : vector<1x32x256xf32> to vector<32x256xf32>
    %45 = vector.shape_cast %37 : vector<32x256xf32> to vector<1x32x256xf32>
    tpu.vector_store %arg7[%c0_21, %c0_22, %c0_23], %45 {strides = array<i32>} : memref<1x32x256xf32, #tpu.memory_space<vmem>>, vector<1x32x256xf32>,
    return
  }
  func.func @transform_0(%arg0: i32, %arg1: i32) -> (i32, i32, i32) {
    %c0_i32 = arith.constant 0 : i32
    %c0_i32_0 = arith.constant 0 : i32
    return %arg0, %c0_i32, %arg1 : i32, i32, i32
  }
  func.func @transform_1(%arg0: i32, %arg1: i32) -> (i32, i32) {
    %c0_i32 = arith.constant 0 : i32
    %c0_i32_0 = arith.constant 0 : i32
    %c0_i32_1 = arith.constant 0 : i32
    return %c0_i32, %c0_i32_0 : i32, i32
  }
  func.func @transform_2(%arg0: i32, %arg1: i32) -> (i32, i32) {
    %c0_i32 = arith.constant 0 : i32
    %c0_i32_0 = arith.constant 0 : i32
    %c0_i32_1 = arith.constant 0 : i32
    return %c0_i32, %c0_i32_0 : i32, i32
  }
  func.func @transform_3(%arg0: i32, %arg1: i32) -> (i32, i32, i32) {
    %c0_i32 = arith.constant 0 : i32
    %c0_i32_0 = arith.constant 0 : i32
    return %arg0, %c0_i32, %arg1 : i32, i32, i32
  }
  func.func @transform_4(%arg0: i32, %arg1: i32) -> (i32, i32, i32) {
    %c0_i32 = arith.constant 0 : i32
    %c0_i32_0 = arith.constant 0 : i32
    return %arg0, %c0_i32, %arg1 : i32, i32, i32
  }
  func.func @transform_5(%arg0: i32, %arg1: i32) -> (i32, i32, i32) {
    %c0_i32 = arith.constant 0 : i32
    %c0_i32_0 = arith.constant 0 : i32
    return %arg0, %c0_i32, %arg1 : i32, i32, i32
  }
}

</mosaic_0001>

<bundles_post_ra>
// kernel: conv_lstm_forward.8
= control target key start
LH: loop header
LB: loop body
LE: loop exit
PB: predicated region body
PF: predicated region fallthrough
CT: control target
= control target key end

     0   :  { %s1391_s18 = smov 0   ;;  %s1393_s19 = smov 0   ;;  %s1884_s0 = inlined_call_operand.vmem [shape: f32[2,384,256], index: 0, kind: input, shape index: {}]   ;;  %s1885_s1 = inlined_call_operand.vmem [shape: f32[128,384], index: 1, kind: input, shape index: {}]   ;;  %s1886_s2 = inlined_call_operand.vmem [shape: f32[128,1], index: 2, kind: input, shape index: {}]   ;;  %s1887_s3 = inlined_call_operand.vmem [shape: f32[2,32,256], index: 3, kind: input, shape index: {}]   ;;  %s1888_s4 = inlined_call_operand.vmem [shape: f32[2,32,256], index: 4, kind: output, shape index: {0}]   ;;  %s1889_s5 = inlined_call_operand.vmem [shape: f32[2,32,256], index: 5, kind: output, shape index: {1}]  }
   0x1   :  { %s1395_s20 = smov 0  }
   0x2 LB: > { %s28_s21 = sadd.s32 1, %s1353_s19  ;;  %p1213_p0 = scmp.ge.s32.totalorder %s1357_s20, 1  ;;  %s1357_s20 = sphi %s1395_s20, %s16_s20   ;;  %s1353_s19 = sphi %s1393_s19, %s1891_s19   ;;  %s1349_s18 = sphi %s1391_s18, %s1890_s18  }
   0x3   : > { %p30_p1 = scmp.ge.s32.totalorder %s28_s21, 2  ;;  %p230_p2 = scmp.lt.s32.totalorder %s1357_s20, 3 }
   0x5   : > { %s1893_s21 = smov (%p30_p1, %s28_s21), 0  ;;  %p231_p3 = pnand %p1213_p0, %p230_p2 }
   0x6   : > { %p285_p4 = scmp.lt.s32.totalorder (!%p231_p3), %s1349_s18, 1 }
   0x7   : > { %234 = sbr.rel (%p231_p3) target bundleno = 375 (0x177), region = 36 }
   0xc   : > { %v421_v0 = vld [vmem:[%s1885_s1 + $0x8] sm:$0xff]  ;;  %v1359_v1 = vmov 0.0   ;;  %s1895_s18 = smov (!%p285_p4, %s1349_s18), 1  ;;  %v1360_v2 = vmov 0  }
   0xd   : > { %628 = vmatprep.mubr.f32.mxu0 %v421_v0  ;;  %789 = vmatprep.mubr.f32.mxu1 %v1359_v1  ;;  %s1226_s24 = smul.u32 768, %s1895_s18  ;;  %s1807_s29 = sshll.u32 %s1895_s18, 6 }
   0xe   : > { %1253 = vset.pattern.permute.xlu0 %v1360_v2  ;;  %1254 = vset.pattern.permute.xlu1 %v1360_v2  ;;  %s1821_s6 = scalar_lea.vmem %s1887_s3, %s1807_s29  ;;  %s1840_s9 = scalar_lea.vmem %s1889_s5, %s1807_s29 }
   0xf   : > { %s1419_s27 = scalar_lea.vmem %s1884_s0, %s1226_s24  ;;  %s1864_s12 = scalar_lea.vmem %s1888_s4, %s1807_s29 }
  0x10   : > { %v355_v3 = vld [vmem:[%s1419_s27 + $0xf8] sm:$0xff]  ;;  %v354_v4 = vld [vmem:[%s1419_s27 + $0xf0] sm:$0xff]  ;;  %v353_v5 = vld [vmem:[%s1419_s27 + $0xe8] sm:$0xff] }
  0x11   : > { %564 = vmatprep.subr.mxu0 %v355_v3  ;;  %v352_v6 = vld [vmem:[%s1419_s27 + $0xe0] sm:$0xff]  ;;  %v351_v7 = vld [vmem:[%s1419_s27 + $0xd8] sm:$0xff]  ;;  %v350_v8 = vld [vmem:[%s1419_s27 + $0xd0] sm:$0xff] }
  0x12   : > { %565 = vmatpush1.msra.mxu0 %v354_v4  ;;  %v349_v9 = vld [vmem:[%s1419_s27 + $0xc8] sm:$0xff]  ;;  %v348_v10 = vld [vmem:[%s1419_s27 + $0xc0] sm:$0xff]  ;;  %v347_v11 = vld [vmem:[%s1419_s27 + $0xb8] sm:$0xff] }
  0x13   : > { %566 = vmatprep.subr.mxu0 %v353_v5  ;;  %v346_v12 = vld [vmem:[%s1419_s27 + $0xb0] sm:$0xff]  ;;  %v345_v13 = vld [vmem:[%s1419_s27 + $0xa8] sm:$0xff]  ;;  %v344_v14 = vld [vmem:[%s1419_s27 + $0xa0] sm:$0xff] }
  0x14   : > { %567 = vmatpush1.msra.mxu0 %v352_v6  ;;  %v343_v15 = vld [vmem:[%s1419_s27 + $0x98] sm:$0xff]  ;;  %v342_v16 = vld [vmem:[%s1419_s27 + $0x90] sm:$0xff]  ;;  %v341_v19 = vld [vmem:[%s1419_s27 + $0x88] sm:$0xff] }
  0x15   : > { %568 = vmatprep.subr.mxu0 %v351_v7  ;;  %v419_v17 = vld [vmem:[%s1419_s27 + $0x2f8] sm:$0xff]  ;;  %v418_v18 = vld [vmem:[%s1419_s27 + $0x2f0] sm:$0xff]  ;;  %v417_v20 = vld [vmem:[%s1419_s27 + $0x2e8] sm:$0xff] }
  0x16   : > { %569 = vmatpush1.msra.mxu0 %v350_v8  ;;  %725 = vmatprep.subr.mxu1 %v419_v17  ;;  %v340_v21 = vld [vmem:[%s1419_s27 + $0x80] sm:$0xff]  ;;  %v415_v23 = vld [vmem:[%s1419_s27 + $0x2d8] sm:$0xff]  ;;  %v414_v25 = vld [vmem:[%s1419_s27 + $0x2d0] sm:$0xff] }
  0x17   : > { %570 = vmatprep.subr.mxu0 %v349_v9  ;;  %726 = vmatpush1.msra.mxu1 %v418_v18  ;;  %v416_v22 = vld [vmem:[%s1419_s27 + $0x2e0] sm:$0xff]  ;;  %v339_v24 = vld [vmem:[%s1419_s27 + $0x78] sm:$0xff]  ;;  %v338_v26 = vld [vmem:[%s1419_s27 + $0x70] sm:$0xff] }
  0x18   : > { %571 = vmatpush1.msra.mxu0 %v348_v10  ;;  %727 = vmatprep.subr.mxu1 %v417_v20  ;;  %v413_v27 = vld [vmem:[%s1419_s27 + $0x2c8] sm:$0xff]  ;;  %v412_v29 = vld [vmem:[%s1419_s27 + $0x2c0] sm:$0xff]  ;;  %v411_v31 = vld [vmem:[%s1419_s27 + $0x2b8] sm:$0xff] }
  0x19   : > { %572 = vmatprep.subr.mxu0 %v347_v11  ;;  %728 = vmatpush1.msra.mxu1 %v416_v22  ;;  %v337_v28 = vld [vmem:[%s1419_s27 + $0x68] sm:$0xff]  ;;  %v336_v30 = vld [vmem:[%s1419_s27 + $0x60] sm:$0xff]  ;;  %v335_v32 = vld [vmem:[%s1419_s27 + $0x58] sm:$0xff] }
  0x1a   : > { %573 = vmatpush1.msra.mxu0 %v346_v12  ;;  %729 = vmatprep.subr.mxu1 %v415_v23  ;;  %v410_v33 = vld [vmem:[%s1419_s27 + $0x2b0] sm:$0xff]  ;;  %v409_v35 = vld [vmem:[%s1419_s27 + $0x2a8] sm:$0xff]  ;;  %v408_v37 = vld [vmem:[%s1419_s27 + $0x2a0] sm:$0xff] }
  0x1b   : > { %574 = vmatprep.subr.mxu0 %v345_v13  ;;  %730 = vmatpush1.msra.mxu1 %v414_v25  ;;  %v334_v34 = vld [vmem:[%s1419_s27 + $0x50] sm:$0xff]  ;;  %v333_v36 = vld [vmem:[%s1419_s27 + $0x48] sm:$0xff]  ;;  %v332_v38 = vld [vmem:[%s1419_s27 + $0x40] sm:$0xff] }
  0x1c   : > { %575 = vmatpush1.msra.mxu0 %v344_v14  ;;  %731 = vmatprep.subr.mxu1 %v413_v27  ;;  %v407_v39 = vld [vmem:[%s1419_s27 + $0x298] sm:$0xff]  ;;  %v406_v41 = vld [vmem:[%s1419_s27 + $0x290] sm:$0xff]  ;;  %v405_v43 = vld [vmem:[%s1419_s27 + $0x288] sm:$0xff] }
  0x1d   : > { %576 = vmatprep.subr.mxu0 %v343_v15  ;;  %732 = vmatpush1.msra.mxu1 %v412_v29  ;;  %v331_v40 = vld [vmem:[%s1419_s27 + $0x38] sm:$0xff]  ;;  %v330_v42 = vld [vmem:[%s1419_s27 + $0x30] sm:$0xff]  ;;  %v329_v44 = vld [vmem:[%s1419_s27 + $0x28] sm:$0xff] }
  0x1e   : > { %577 = vmatpush1.msra.mxu0 %v342_v16  ;;  %733 = vmatprep.subr.mxu1 %v411_v31  ;;  %v404_v45 = vld [vmem:[%s1419_s27 + $0x280] sm:$0xff]  ;;  %v403_v47 = vld [vmem:[%s1419_s27 + $0x278] sm:$0xff]  ;;  %v402_v49 = vld [vmem:[%s1419_s27 + $0x270] sm:$0xff] }
  0x1f   : > { %578 = vmatprep.subr.mxu0 %v341_v19  ;;  %734 = vmatpush1.msra.mxu1 %v410_v33  ;;  %v328_v46 = vld [vmem:[%s1419_s27 + $0x20] sm:$0xff]  ;;  %v327_v48 = vld [vmem:[%s1419_s27 + $0x18] sm:$0xff]  ;;  %v326_v50 = vld [vmem:[%s1419_s27 + $0x10] sm:$0xff] }
  0x20   : > { %579 = vmatpush1.msra.mxu0 %v340_v21  ;;  %735 = vmatprep.subr.mxu1 %v409_v35  ;;  %v401_v51 = vld [vmem:[%s1419_s27 + $0x268] sm:$0xff]  ;;  %v400_v53 = vld [vmem:[%s1419_s27 + $0x260] sm:$0xff]  ;;  %v399_v55 = vld [vmem:[%s1419_s27 + $0x258] sm:$0xff] }
  0x21   : > { %580 = vmatprep.subr.mxu0 %v339_v24  ;;  %736 = vmatpush1.msra.mxu1 %v408_v37  ;;  %v325_v52 = vld [vmem:[%s1419_s27 + $0x8] sm:$0xff]  ;;  %v324_v54 = vld [vmem:[%s1419_s27] sm:$0xff]  ;;  %v387_v56 = vld [vmem:[%s1419_s27 + $0x1f8] sm:$0xff] }
  0x22   : > { %581 = vmatpush1.msra.mxu0 %v338_v26  ;;  %737 = vmatprep.subr.mxu1 %v407_v39  ;;  %v398_v57 = vld [vmem:[%s1419_s27 + $0x250] sm:$0xff]  ;;  %v397_v59 = vld [vmem:[%s1419_s27 + $0x248] sm:$0xff]  ;;  %v396_v61 = vld [vmem:[%s1419_s27 + $0x240] sm:$0xff] }
  0x23   : > { %582 = vmatprep.subr.mxu0 %v337_v28  ;;  %738 = vmatpush1.msra.mxu1 %v406_v41  ;;  %v386_v58 = vld [vmem:[%s1419_s27 + $0x1f0] sm:$0xff]  ;;  %v385_v60 = vld [vmem:[%s1419_s27 + $0x1e8] sm:$0xff]  ;;  %v384_v62 = vld [vmem:[%s1419_s27 + $0x1e0] sm:$0xff] }
  0x24   : > { %583 = vmatpush1.msra.mxu0 %v336_v30  ;;  %739 = vmatprep.subr.mxu1 %v405_v43  ;;  %v395_v63 = vld [vmem:[%s1419_s27 + $0x238] sm:$0xff]  ;;  %v394_v2 = vld [vmem:[%s1419_s27 + $0x230] sm:$0xff]  ;;  %v393_v4 = vld [vmem:[%s1419_s27 + $0x228] sm:$0xff] }
  0x25   : > { %584 = vmatprep.subr.mxu0 %v335_v32  ;;  %740 = vmatpush1.msra.mxu1 %v404_v45  ;;  %v383_v0 = vld [vmem:[%s1419_s27 + $0x1d8] sm:$0xff]  ;;  %v382_v3 = vld [vmem:[%s1419_s27 + $0x1d0] sm:$0xff]  ;;  %v381_v5 = vld [vmem:[%s1419_s27 + $0x1c8] sm:$0xff] }
  0x26   : > { %585 = vmatpush1.msra.mxu0 %v334_v34  ;;  %741 = vmatprep.subr.mxu1 %v403_v47  ;;  %v392_v6 = vld [vmem:[%s1419_s27 + $0x220] sm:$0xff]  ;;  %v391_v8 = vld [vmem:[%s1419_s27 + $0x218] sm:$0xff]  ;;  %v390_v10 = vld [vmem:[%s1419_s27 + $0x210] sm:$0xff] }
  0x27   : > { %586 = vmatprep.subr.mxu0 %v333_v36  ;;  %742 = vmatpush1.msra.mxu1 %v402_v49  ;;  %v380_v7 = vld [vmem:[%s1419_s27 + $0x1c0] sm:$0xff]  ;;  %v379_v9 = vld [vmem:[%s1419_s27 + $0x1b8] sm:$0xff]  ;;  %v378_v11 = vld [vmem:[%s1419_s27 + $0x1b0] sm:$0xff] }
  0x28   : > { %587 = vmatpush1.msra.mxu0 %v332_v38  ;;  %743 = vmatprep.subr.mxu1 %v401_v51  ;;  %v389_v12 = vld [vmem:[%s1419_s27 + $0x208] sm:$0xff]  ;;  %v388_v14 = vld [vmem:[%s1419_s27 + $0x200] sm:$0xff]  ;;  %v422_v16 = vld [vmem:[%s1885_s1 + $0x10] sm:$0xff] }
  0x29   : > { %588 = vmatprep.subr.mxu0 %v331_v40  ;;  %744 = vmatpush1.msra.mxu1 %v400_v53  ;;  %v377_v13 = vld [vmem:[%s1419_s27 + $0x1a8] sm:$0xff]  ;;  %v376_v15 = vld [vmem:[%s1419_s27 + $0x1a0] sm:$0xff]  ;;  %v375_v17 = vld [vmem:[%s1419_s27 + $0x198] sm:$0xff] }
  0x2a   : > { %589 = vmatpush1.msra.mxu0 %v330_v42  ;;  %745 = vmatprep.subr.mxu1 %v399_v55  ;;  %v374_v18 = vld [vmem:[%s1419_s27 + $0x190] sm:$0xff]  ;;  %v468_v19 = vld [vmem:[%s1886_s2] sm:$0xff]  ;;  %v373_v20 = vld [vmem:[%s1419_s27 + $0x188] sm:$0xff] }
  0x2b   : > { %590 = vmatprep.subr.mxu0 %v329_v44  ;;  %746 = vmatpush1.msra.mxu1 %v398_v57  ;;  %v470_v21 = vld [vmem:[%s1886_s2 + $0x10] sm:$0xff]  ;;  %v372_v22 = vld [vmem:[%s1419_s27 + $0x180] sm:$0xff]  ;;  %v425_v23 = vld [vmem:[%s1885_s1 + $0x28] sm:$0xff] }
  0x2c   : > { %591 = vmatpush1.msra.mxu0 %v328_v46  ;;  %747 = vmatprep.subr.mxu1 %v397_v59  ;;  %v371_v24 = vld [vmem:[%s1419_s27 + $0x178] sm:$0xff]  ;;  %v370_v25 = vld [vmem:[%s1419_s27 + $0x170] sm:$0xff]  ;;  %v469_v26 = vld [vmem:[%s1886_s2 + $0x8] sm:$0xff] }
  0x2d   : > { %592 = vmatprep.subr.mxu0 %v327_v48  ;;  %748 = vmatpush1.msra.mxu1 %v396_v61  ;;  %v369_v27 = vld [vmem:[%s1419_s27 + $0x168] sm:$0xff]  ;;  %v471_v28 = vld [vmem:[%s1886_s2 + $0x18] sm:$0xff]  ;;  %v368_v29 = vld [vmem:[%s1419_s27 + $0x160] sm:$0xff] }
  0x2e   : > { %593 = vmatpush1.msra.mxu0 %v326_v50  ;;  %749 = vmatprep.subr.mxu1 %v395_v63  ;;  %v428_v30 = vld [vmem:[%s1885_s1 + $0x40] sm:$0xff]  ;;  %v367_v31 = vld [vmem:[%s1419_s27 + $0x158] sm:$0xff]  ;;  %v366_v32 = vld [vmem:[%s1419_s27 + $0x150] sm:$0xff] }
  0x2f   : > { %594 = vmatprep.subr.mxu0 %v325_v52  ;;  %750 = vmatpush1.msra.mxu1 %v394_v2  ;;  %v472_v33 = vld [vmem:[%s1886_s2 + $0x20] sm:$0xff]  ;;  %v365_v34 = vld [vmem:[%s1419_s27 + $0x148] sm:$0xff]  ;;  %v431_v37 = vld [vmem:[%s1885_s1 + $0x58] sm:$0xff] }
  0x30   : > { %595 = vmatpush1.msra.mxu0 %v324_v54  ;;  %751 = vmatprep.subr.mxu1 %v393_v4  ;;  %v473_v35 = vld [vmem:[%s1886_s2 + $0x28] sm:$0xff]  ;;  %v364_v36 = vld [vmem:[%s1419_s27 + $0x140] sm:$0xff]  ;;  %v363_v38 = vld [vmem:[%s1419_s27 + $0x138] sm:$0xff] }
  0x31   : > { %596 = vmatprep.subr.mxu0 %v387_v56  ;;  %752 = vmatpush1.msra.mxu1 %v392_v6  ;;  %v362_v39 = vld [vmem:[%s1419_s27 + $0x130] sm:$0xff]  ;;  %v361_v41 = vld [vmem:[%s1419_s27 + $0x128] sm:$0xff]  ;;  %v475_v42 = vld [vmem:[%s1886_s2 + $0x38] sm:$0xff] }
  0x32   : > { %597 = vmatpush2.msra.mxu0 %v386_v58  ;;  %753 = vmatprep.subr.mxu1 %v391_v8  ;;  %v474_v40 = vld [vmem:[%s1886_s2 + $0x30] sm:$0xff]  ;;  %v360_v43 = vld [vmem:[%s1419_s27 + $0x120] sm:$0xff]  ;;  %v359_v45 = vld [vmem:[%s1419_s27 + $0x118] sm:$0xff] }
  0x33   : > { %598 = vmatprep.subr.mxu0 %v385_v60  ;;  %754 = vmatpush1.msra.mxu1 %v390_v10  ;;  %v434_v44 = vld [vmem:[%s1885_s1 + $0x70] sm:$0xff]  ;;  %v480_v47 = vld [vmem:[%s1886_s2 + $0x60] sm:$0xff]  ;;  %v357_v48 = vld [vmem:[%s1419_s27 + $0x108] sm:$0xff] }
  0x34   : > { %599 = vmatpush2.msra.mxu0 %v384_v62  ;;  %755 = vmatprep.subr.mxu1 %v389_v12  ;;  %v358_v46 = vld [vmem:[%s1419_s27 + $0x110] sm:$0xff]  ;;  %v481_v49 = vld [vmem:[%s1886_s2 + $0x68] sm:$0xff]  ;;  %v356_v50 = vld [vmem:[%s1419_s27 + $0x100] sm:$0xff] }
  0x35   : > { %600 = vmatprep.subr.mxu0 %v383_v0  ;;  %756 = vmatpush1.msra.mxu1 %v388_v14  ;;  %v437_v51 = vld [vmem:[%s1885_s1 + $0x88] sm:$0xff]  ;;  %v420_v52 = vld [vmem:[%s1885_s1] sm:$0xff]  ;;  %v482_v54 = vld [vmem:[%s1886_s2 + $0x70] sm:$0xff] }
  0x36   : > { %601 = vmatpush2.msra.mxu0 %v382_v3  ;;  %790 = vmatmul.mubr.f32.vlgmr.msra.gmra.mxu1 %v422_v16  ;;  %v424_v53 = vld [vmem:[%s1885_s1 + $0x20] sm:$0xff]  ;;  %v483_v55 = vld [vmem:[%s1886_s2 + $0x78] sm:$0xff]  ;;  %v477_v60 = vld [vmem:[%s1886_s2 + $0x48] sm:$0xff] }
  0x37   : > { %602 = vmatprep.subr.mxu0 %v381_v5  ;;  %795 = vmatprep.mubr.f32.mxu1 %v1359_v1  ;;  %v440_v56 = vld [vmem:[%s1885_s1 + $0xa0] sm:$0xff]  ;;  %v423_v57 = vld [vmem:[%s1885_s1 + $0x18] sm:$0xff]  ;;  %v426_v62 = vld [vmem:[%s1885_s1 + $0x30] sm:$0xff] }
  0x38   : > { %603 = vmatpush2.msra.mxu0 %v380_v7  ;;  %486 = vperm.xlu0 %1253, %v468_v19   ;;  %v427_v58 = vld [vmem:[%s1885_s1 + $0x38] sm:$0xff]  ;;  %v476_v59 = vld [vmem:[%s1886_s2 + $0x40] sm:$0xff]  ;;  %v430_v63 = vld [vmem:[%s1885_s1 + $0x50] sm:$0xff] }
  0x39   : > { %604 = vmatprep.subr.mxu0 %v379_v9  ;;  %496 = vperm.xlu1 %1254, %v470_v21   ;;  %v443_v61 = vld [vmem:[%s1885_s1 + $0xb8] sm:$0xff]  ;;  %v478_v0 = vld [vmem:[%s1886_s2 + $0x50] sm:$0xff]  ;;  %v429_v4 = vld [vmem:[%s1885_s1 + $0x48] sm:$0xff] }
  0x3a   : > { %605 = vmatpush2.msra.mxu0 %v378_v11  ;;  %796 = vmatmul.mubr.f32.gmra.mxu1 %v425_v23  ;;  %v479_v2 = vld [vmem:[%s1886_s2 + $0x58] sm:$0xff]  ;;  %v446_v3 = vld [vmem:[%s1885_s1 + $0xd0] sm:$0xff]  ;;  %v433_v5 = vld [vmem:[%s1885_s1 + $0x68] sm:$0xff] }
  0x3b   : > { %606 = vmatprep.subr.mxu0 %v377_v13  ;;  %801 = vmatprep.mubr.f32.mxu1 %v1359_v1  ;;  %v449_v6 = vld [vmem:[%s1885_s1 + $0xe8] sm:$0xff]  ;;  %v432_v7 = vld [vmem:[%s1885_s1 + $0x60] sm:$0xff]  ;;  %v435_v10 = vld [vmem:[%s1885_s1 + $0x78] sm:$0xff] }
  0x3c   : > { %607 = vmatpush2.msra.mxu0 %v376_v15  ;;  %491 = vperm.xlu0 %1253, %v469_v26   ;;  %v436_v8 = vld [vmem:[%s1885_s1 + $0x80] sm:$0xff]  ;;  %v439_v11 = vld [vmem:[%s1885_s1 + $0x98] sm:$0xff]  ;;  %v438_v13 = vld [vmem:[%s1885_s1 + $0x90] sm:$0xff] }
  0x3d   : > { %608 = vmatprep.subr.mxu0 %v375_v17  ;;  %501 = vperm.xlu1 %1254, %v471_v28   ;;  %v452_v9 = vld [vmem:[%s1885_s1 + $0x100] sm:$0xff]  ;;  %v455_v12 = vld [vmem:[%s1885_s1 + $0x118] sm:$0xff]  ;;  %v442_v14 = vld [vmem:[%s1885_s1 + $0xb0] sm:$0xff] }
  0x3e   : > { %609 = vmatpush2.msra.mxu0 %v374_v18  ;;  %802 = vmatmul.mubr.f32.gmra.mxu1 %v428_v30  ;;  %v458_v15 = vld [vmem:[%s1885_s1 + $0x130] sm:$0xff]  ;;  %v441_v16 = vld [vmem:[%s1885_s1 + $0xa8] sm:$0xff]  ;;  %v444_v19 = vld [vmem:[%s1885_s1 + $0xc0] sm:$0xff] }
  0x3f   : > { %610 = vmatprep.subr.mxu0 %v373_v20  ;;  %807 = vmatprep.mubr.f32.mxu1 %v1359_v1  ;;  %v445_v17 = vld [vmem:[%s1885_s1 + $0xc8] sm:$0xff]  ;;  %v448_v20 = vld [vmem:[%s1885_s1 + $0xe0] sm:$0xff]  ;;  %v451_v23 = vld [vmem:[%s1885_s1 + $0xf8] sm:$0xff] }
  0x40   : > { %611 = vmatpush2.msra.mxu0 %v372_v22  ;;  %506 = vperm.xlu0 %1253, %v472_v33   ;;  %v461_v18 = vld [vmem:[%s1885_s1 + $0x148] sm:$0xff]  ;;  %v464_v21 = vld [vmem:[%s1885_s1 + $0x160] sm:$0xff]  ;;  %v447_v22 = vld [vmem:[%s1885_s1 + $0xd8] sm:$0xff] }
  0x41   : > { %612 = vmatprep.subr.mxu0 %v371_v24  ;;  %511 = vperm.xlu1 %1254, %v473_v35   ;;  %v467_v24 = vld [vmem:[%s1885_s1 + $0x178] sm:$0xff]  ;;  %v454_v26 = vld [vmem:[%s1885_s1 + $0x110] sm:$0xff]  ;;  %v456_v28 = vld [vmem:[%s1885_s1 + $0x120] sm:$0xff] }
  0x42   : > { %613 = vmatpush2.msra.mxu0 %v370_v25  ;;  %808 = vmatmul.mubr.f32.gmra.mxu1 %v431_v37  ;;  %v450_v25 = vld [vmem:[%s1885_s1 + $0xf0] sm:$0xff]  ;;  %v459_v30 = vld [vmem:[%s1885_s1 + $0x138] sm:$0xff] }
  0x43   : > { %614 = vmatprep.subr.mxu0 %v369_v27  ;;  %813 = vmatprep.mubr.f32.mxu1 %v1359_v1  ;;  %v457_v27 = vld [vmem:[%s1885_s1 + $0x128] sm:$0xff]  ;;  %v466_v33 = vld [vmem:[%s1885_s1 + $0x170] sm:$0xff] }
  0x44   : > { %615 = vmatpush2.msra.mxu0 %v368_v29  ;;  %516 = vperm.xlu0 %1253, %v474_v40   ;;  %v460_v29 = vld [vmem:[%s1885_s1 + $0x140] sm:$0xff] }
  0x45   : > { %616 = vmatprep.subr.mxu0 %v367_v31  ;;  %521 = vperm.xlu1 %1254, %v475_v42   ;;  %v463_v31 = vld [vmem:[%s1885_s1 + $0x158] sm:$0xff] }
  0x46   : > { %617 = vmatpush2.msra.mxu0 %v366_v32  ;;  %814 = vmatmul.mubr.f32.gmra.mxu1 %v434_v44  ;;  %v462_v32 = vld [vmem:[%s1885_s1 + $0x150] sm:$0xff] }
  0x47   : > { %618 = vmatprep.subr.mxu0 %v365_v34  ;;  %819 = vmatprep.mubr.f32.mxu1 %v1359_v1  ;;  %v465_v34 = vld [vmem:[%s1885_s1 + $0x168] sm:$0xff] }
  0x48   : > { %619 = vmatpush2.msra.mxu0 %v364_v36  ;;  %546 = vperm.xlu0 %1253, %v480_v47  }
  0x49   : > { %620 = vmatprep.subr.mxu0 %v363_v38  ;;  %551 = vperm.xlu1 %1254, %v481_v49  }
  0x4a   : > { %621 = vmatpush2.msra.mxu0 %v362_v39  ;;  %820 = vmatmul.mubr.f32.gmra.mxu1 %v437_v51 }
  0x4b   : > { %622 = vmatprep.subr.mxu0 %v361_v41  ;;  %825 = vmatprep.mubr.f32.mxu1 %v1359_v1 }
  0x4c   : > { %623 = vmatpush2.msra.mxu0 %v360_v43  ;;  %556 = vperm.xlu0 %1253, %v482_v54  }
  0x4d   : > { %624 = vmatprep.subr.mxu0 %v359_v45  ;;  %561 = vperm.xlu1 %1254, %v483_v55  }
  0x4e   : > { %625 = vmatpush2.msra.mxu0 %v358_v46  ;;  %826 = vmatmul.mubr.f32.gmra.mxu1 %v440_v56 }
  0x4f   : > { %626 = vmatprep.subr.mxu0 %v357_v48  ;;  %831 = vmatprep.mubr.f32.mxu1 %v1359_v1 }
  0x50   : > { %627 = vmatpush2.msra.mxu0 %v356_v50  ;;  %526 = vperm.xlu0 %1253, %v476_v59  }
  0x51   : > { %629 = vmatmul.mubr.f32.vlgmr.msra.gmra.mxu0 %v420_v52  ;;  %531 = vperm.xlu1 %1254, %v477_v60  }
  0x52   : > { %634 = vmatprep.mubr.f32.mxu0 %v424_v53  ;;  %832 = vmatmul.mubr.f32.gmra.mxu1 %v443_v61 }
  0x53   : > { %837 = vmatprep.mubr.f32.mxu1 %v1359_v1 }
  0x54   : > { %536 = vperm.xlu0 %1253, %v478_v0  }
  0x55   : > { %635 = vmatmul.mubr.f32.gmra.mxu0 %v423_v57  ;;  %541 = vperm.xlu1 %1254, %v479_v2  }
  0x56   : > { %640 = vmatprep.mubr.f32.mxu0 %v427_v58  ;;  %838 = vmatmul.mubr.f32.gmra.mxu1 %v446_v3 }
  0x57   : > { %843 = vmatprep.mubr.f32.mxu1 %v1359_v1 }
  0x59   : > { %641 = vmatmul.mubr.f32.gmra.mxu0 %v426_v62 }
  0x5a   : > { %646 = vmatprep.mubr.f32.mxu0 %v430_v63  ;;  %844 = vmatmul.mubr.f32.gmra.mxu1 %v449_v6 }
  0x5b   : > { %849 = vmatprep.mubr.f32.mxu1 %v1359_v1 }
  0x5d   : > { %647 = vmatmul.mubr.f32.gmra.mxu0 %v429_v4 }
  0x5e   : > { %652 = vmatprep.mubr.f32.mxu0 %v433_v5  ;;  %850 = vmatmul.mubr.f32.gmra.mxu1 %v452_v9 }
  0x5f   : > { %855 = vmatprep.mubr.f32.mxu1 %v1359_v1 }
  0x61   : > { %653 = vmatmul.mubr.f32.gmra.mxu0 %v432_v7 }
  0x62   : > { %658 = vmatprep.mubr.f32.mxu0 %v436_v8  ;;  %856 = vmatmul.mubr.f32.gmra.mxu1 %v455_v12 }
  0x63   : > { %861 = vmatprep.mubr.f32.mxu1 %v1359_v1 }
  0x65   : > { %659 = vmatmul.mubr.f32.gmra.mxu0 %v435_v10 }
  0x66   : > { %664 = vmatprep.mubr.f32.mxu0 %v439_v11  ;;  %862 = vmatmul.mubr.f32.gmra.mxu1 %v458_v15 }
  0x67   : > { %867 = vmatprep.mubr.f32.mxu1 %v1359_v1 }
  0x69   : > { %665 = vmatmul.mubr.f32.gmra.mxu0 %v438_v13 }
  0x6a   : > { %670 = vmatprep.mubr.f32.mxu0 %v442_v14  ;;  %868 = vmatmul.mubr.f32.gmra.mxu1 %v461_v18 }
  0x6b   : > { %873 = vmatprep.mubr.f32.mxu1 %v1359_v1 }
  0x6d   : > { %671 = vmatmul.mubr.f32.gmra.mxu0 %v441_v16 }
  0x6e   : > { %676 = vmatprep.mubr.f32.mxu0 %v445_v17  ;;  %874 = vmatmul.mubr.f32.gmra.mxu1 %v464_v21 }
  0x6f   : > { %879 = vmatprep.mubr.f32.mxu1 %v1359_v1  ;;  %v453_v1 = vld [vmem:[%s1885_s1 + $0x108] sm:$0xff] }
  0x71   : > { %677 = vmatmul.mubr.f32.gmra.mxu0 %v444_v19 }
  0x72   : > { %682 = vmatprep.mubr.f32.mxu0 %v448_v20  ;;  %880 = vmatmul.mubr.f32.gmra.mxu1 %v467_v24 }
  0x75   : > { %683 = vmatmul.mubr.f32.gmra.mxu0 %v447_v22 }
  0x76   : > { %688 = vmatprep.mubr.f32.mxu0 %v451_v23 }
  0x79   : > { %689 = vmatmul.mubr.f32.gmra.mxu0 %v450_v25 }
  0x7a   : > { %694 = vmatprep.mubr.f32.mxu0 %v454_v26 }
  0x7d   : > { %695 = vmatmul.mubr.f32.gmra.mxu0 %v453_v1 }
  0x7e   : > { %700 = vmatprep.mubr.f32.mxu0 %v457_v27 }
  0x81   : > { %701 = vmatmul.mubr.f32.gmra.mxu0 %v456_v28 }
  0x82   : > { %706 = vmatprep.mubr.f32.mxu0 %v460_v29 }
  0x85   : > { %707 = vmatmul.mubr.f32.gmra.mxu0 %v459_v30 }
  0x86   : > { %712 = vmatprep.mubr.f32.mxu0 %v463_v31 }
  0x89   : > { %713 = vmatmul.mubr.f32.gmra.mxu0 %v462_v32 }
  0x8a   : > { %718 = vmatprep.mubr.f32.mxu0 %v466_v33 }
  0x8d   : > { %719 = vmatmul.mubr.f32.gmra.mxu0 %v465_v34 }
  0xb3   : > { %v487_v56 = vpop.permute.xlu0 %486 }
  0xb4   : > { %v497_v62 = vpop.permute.xlu1 %496 }
  0xb7   : > { %v492_v0 = vpop.permute.xlu0 %491 }
  0xb8   : > { %v502_v8 = vpop.permute.xlu1 %501 }
  0xbb   : > { %v507_v5 = vpop.permute.xlu0 %506 }
  0xbc   : > { %v512_v15 = vpop.permute.xlu1 %511 }
  0xbf   : > { %v517_v18 = vpop.permute.xlu0 %516 }
  0xc0   : > { %v522_v28 = vpop.permute.xlu1 %521 }
  0xc3   : > { %v1755_v32 = vpop.permute.xlu0 %546 }
  0xf6   : > { %v791_v35 = vpop.f32.mrf.mxu1 }
  0xf8   : > { %v793_v36 = vpop.f32.mrf.mxu1 }
  0xfa   : > { %v797_v37 = vpop.f32.mrf.mxu1 }
  0xfc   : > { %v799_v38 = vpop.f32.mrf.mxu1 }
  0xfe   : > { %v1721_v39 = vpop.f32.mrf.mxu1 }
 0x100   : > { %v1723_v40 = vpop.f32.mrf.mxu1 }
 0x102   : > { %v1725_v41 = vpop.f32.mrf.mxu1 }
 0x104   : > { %v1727_v42 = vpop.f32.mrf.mxu1 }
 0x106   : > { %v815_v43 = vpop.f32.mrf.mxu1 }
 0x108   : > { %v817_v44 = vpop.f32.mrf.mxu1 }
 0x10a   : > { %v1729_v45 = vpop.f32.mrf.mxu1 }
 0x10c   : > { %v1731_v47 = vpop.f32.mrf.mxu1 }
 0x10e   : > { %v1733_v49 = vpop.f32.mrf.mxu1 }
 0x110   : > { %v1735_v51 = vpop.f32.mrf.mxu1 }
 0x111   : > { %v630_v46 = vpop.f32.mrf.mxu0 }
 0x112   : > { %v1737_v53 = vpop.f32.mrf.mxu1  ;;  %v631_v7 = vadd.f32 %v630_v46, %v487_v56 }
 0x113   : > { %v632_v48 = vpop.f32.mrf.mxu0 }
 0x114   : > { %v1739_v55 = vpop.f32.mrf.mxu1  ;;  %v633_v10 = vadd.f32 %v632_v48, %v487_v56  ;;  %v792_v14 = vadd.f32 %v791_v35, %v631_v7 }
 0x115   : > { %v636_v50 = vpop.f32.mrf.mxu0 }
 0x116   : > { %v1741_v58 = vpop.f32.mrf.mxu1  ;;  %v637_v12 = vadd.f32 %v636_v50, %v492_v0  ;;  %v794_v17 = vadd.f32 %v793_v36, %v633_v10  ;;  %v886_v23 = vmul.f32 0.5, %v792_v14 }
 0x117   : > { %v638_v52 = vpop.f32.mrf.mxu0 }
 0x118   : > { %v1743_v60 = vpop.f32.mrf.mxu1  ;;  %v798_v20 = vadd.f32 %v797_v37, %v637_v12  ;;  %v639_v21 = vadd.f32 %v638_v52, %v492_v0  ;;  %v887_v26 = vmul.f32 0.5, %v794_v17  ;;  %1255 = vtanh.f32 %v886_v23 }
 0x119   : > { %v642_v54 = vpop.f32.mrf.mxu0 }
 0x11a   : > { %v1745_v63 = vpop.f32.mrf.mxu1  ;;  %v888_v29 = vmul.f32 0.5, %v798_v20  ;;  %v800_v30 = vadd.f32 %v799_v38, %v639_v21  ;;  %1257 = vtanh.f32 %v887_v26  ;;  %v643_v36 = vadd.f32 %v642_v54, %v497_v62 }
 0x11b   : > { %v644_v57 = vpop.f32.mrf.mxu0 }
 0x11c   : > { %v1747_v3 = vpop.f32.mrf.mxu1  ;;  %v645_v48 = vadd.f32 %v644_v57, %v497_v62  ;;  %1259 = vtanh.f32 %v888_v29  ;;  %v889_v50 = vmul.f32 0.5, %v800_v30 }
 0x11d   : > { %v648_v59 = vpop.f32.mrf.mxu0 }
 0x11e   : > { %v1749_v9 = vpop.f32.mrf.mxu1  ;;  %v649_v52 = vadd.f32 %v648_v59, %v502_v8  ;;  %v806_v57 = vadd.f32 %v1723_v40, %v645_v48  ;;  %1261 = vtanh.f32 %v889_v50 }
 0x11f   : > { %v650_v61 = vpop.f32.mrf.mxu0 }
 0x120   : > { %v1751_v16 = vpop.f32.mrf.mxu1  ;;  %v651_v59 = vadd.f32 %v650_v61, %v502_v8  ;;  %v891_v40 = vmul.f32 0.5, %v806_v57 }
 0x121   : > { %v654_v2 = vpop.f32.mrf.mxu0 }
 0x122   : > { %v655_v24 = vadd.f32 %v654_v2, %v507_v5  ;;  %v1753_v25 = vpop.f32.mrf.mxu1  ;;  %v812_v61 = vadd.f32 %v1727_v42, %v651_v59 }
 0x123   : > { %v656_v4 = vpop.f32.mrf.mxu0 }
 0x124   : > { %v657_v1 = vadd.f32 %v656_v4, %v507_v5  ;;  %v816_v34 = vadd.f32 %v815_v43, %v655_v24  ;;  %v1757_v35 = vpop.f32.mrf.mxu1  ;;  %v1764_v4 = vpop.permute.xlu1 %551  ;;  %v804_v5 = vadd.f32 %v1721_v39, %v643_v36 }
 0x125   : > { %v660_v6 = vpop.f32.mrf.mxu0  ;;  %v1256_v24 = vpop.eup %1255 }
 0x126   : > { %v661_v31 = vadd.f32 %v660_v6, %v512_v15  ;;  %v818_v37 = vadd.f32 %v817_v44, %v657_v1  ;;  %v918_v0 = vmul.f32 0.5, %v816_v34  ;;  %v863_v43 = vpop.f32.mrf.mxu1  ;;  %v1767_v44 = vpop.permute.xlu0 %556  ;;  %v890_v14 = vmul.f32 0.5, %v804_v5 }
 0x127   : > { %v662_v11 = vpop.f32.mrf.mxu0  ;;  %v1258_v42 = vpop.eup %1257  ;;  %v893_v1 = vmul.f32 0.5, %v812_v61 }
 0x128   : > { %v822_v56 = vadd.f32 %v1729_v45, %v661_v31  ;;  %v663_v2 = vadd.f32 %v662_v11, %v512_v15  ;;  %v919_v6 = vmul.f32 0.5, %v818_v37  ;;  %v810_v45 = vadd.f32 %v1725_v41, %v649_v52  ;;  %v865_v39 = vpop.f32.mrf.mxu1  ;;  %v1780_v8 = vpop.permute.xlu1 %561 }
 0x129   : > { %v666_v13 = vpop.f32.mrf.mxu0  ;;  %1263 = vtanh.f32 %v918_v0  ;;  %v902_v31 = vmul.f32 0.5, %v1256_v24  ;;  %v903_v48 = vmul.f32 0.5, %v1258_v42 }
 0x12a   : > { %v667_v54 = vadd.f32 %v666_v13, %v517_v18  ;;  %v920_v62 = vmul.f32 0.5, %v822_v56  ;;  %v824_v12 = vadd.f32 %v1731_v47, %v663_v2  ;;  %1265 = vtanh.f32 %v919_v6  ;;  %v527_v20 = vpop.permute.xlu0 %526  ;;  %v869_v23 = vpop.f32.mrf.mxu1 }
 0x12b   : > { %v668_v19 = vpop.f32.mrf.mxu0  ;;  %v892_v41 = vmul.f32 0.5, %v810_v45 }
 0x12c   : > { %v669_v10 = vadd.f32 %v668_v19, %v517_v18  ;;  %v828_v13 = vadd.f32 %v1733_v49, %v667_v54  ;;  %1267 = vtanh.f32 %v920_v62  ;;  %v921_v21 = vmul.f32 0.5, %v824_v12  ;;  %v532_v34 = vpop.permute.xlu1 %531  ;;  %v871_v37 = vpop.f32.mrf.mxu1 }
 0x12d   : > { %v672_v22 = vpop.f32.mrf.mxu0  ;;  %1269 = vtanh.f32 %v890_v14  ;;  %v1795_v62 = vadd.f32 0.5, %v902_v31 }
 0x12e   : > { %v673_v15 = vadd.f32 %v672_v22, %v522_v28  ;;  %v830_v18 = vadd.f32 %v1735_v51, %v669_v10  ;;  %v922_v49 = vmul.f32 0.5, %v828_v13  ;;  %1271 = vtanh.f32 %v891_v40  ;;  %v875_v45 = vpop.f32.mrf.mxu1  ;;  %v537_v14 = vpop.permute.xlu0 %536 }
 0x12f   : > { %v674_v27 = vpop.f32.mrf.mxu0  ;;  %1273 = vtanh.f32 %v892_v41  ;;  %v1797_v10 = vadd.f32 0.5, %v903_v48 }
 0x130   : > { %v675_v19 = vadd.f32 %v674_v27, %v522_v28  ;;  %v834_v22 = vadd.f32 %v1737_v53, %v673_v15  ;;  %v923_v30 = vmul.f32 0.5, %v830_v18  ;;  %v1260_v28 = vpop.eup %1259  ;;  %1275 = vtanh.f32 %v921_v21 }
 0x131   : > { %v678_v33 = vpop.f32.mrf.mxu0  ;;  %1277 = vtanh.f32 %v922_v49  ;;  %v904_v0 = vmul.f32 0.5, %v1260_v28  ;;  %v1262_v54 = vpop.eup %1261 }
 0x132   : > { %v679_v29 = vadd.f32 %v678_v33, %v527_v20  ;;  %v836_v51 = vadd.f32 %v1739_v55, %v675_v19  ;;  %v924_v53 = vmul.f32 0.5, %v834_v22  ;;  %1279 = vtanh.f32 %v893_v1 }
 0x133   : > { %v1759_v46 = vpop.f32.mrf.mxu0  ;;  %1281 = vtanh.f32 %v923_v30  ;;  %v1801_v13 = vadd.f32 0.5, %v904_v0  ;;  %v905_v18 = vmul.f32 0.5, %v1262_v54  ;;  %v990_v0 = vld [vmem:[%s1821_s6] sm:$0xff] }
 0x134   : > { %v681_v50 = vadd.f32 %v1759_v46, %v527_v20  ;;  %v840_v33 = vadd.f32 %v1741_v58, %v679_v29  ;;  %v925_v2 = vmul.f32 0.5, %v836_v51  ;;  %v877_v20 = vpop.f32.mrf.mxu1 }
 0x135   : > { %v1762_v38 = vpop.f32.mrf.mxu0 }
 0x136   : > { %v685_v5 = vadd.f32 %v1762_v38, %v532_v34  ;;  %v1264_v46 = vpop.eup %1263  ;;  %v842_v58 = vadd.f32 %v1743_v60, %v681_v50  ;;  %v950_v12 = vmul.f32 0.5, %v840_v33 }
 0x137   : > { %v1769_v7 = vpop.f32.mrf.mxu0  ;;  %v934_v60 = vmul.f32 0.5, %v1264_v46 }
 0x138   : > { %v687_v38 = vadd.f32 %v1769_v7, %v532_v34  ;;  %v846_v15 = vadd.f32 %v1745_v63, %v685_v5  ;;  %v951_v21 = vmul.f32 0.5, %v842_v58  ;;  %v881_v34 = vpop.f32.mrf.mxu1 }
 0x139   : > { %v1773_v11 = vpop.f32.mrf.mxu0 }
 0x13a   : > { %v952_v30 = vmul.f32 0.5, %v846_v15  ;;  %v883_v46 = vpop.f32.mrf.mxu1 }
 0x13b   : > { %v1777_v17 = vpop.f32.mrf.mxu0 }
 0x13c   : > { %v693_v51 = vadd.f32 %v1777_v17, %v537_v14  ;;  %v942_v17 = vadd.f32 0.5, %v934_v60 }
 0x13d   : > { %v1783_v47 = vpop.f32.mrf.mxu0 }
 0x13e   : > { %v854_v5 = vadd.f32 %v1751_v16, %v693_v51 }
 0x13f   : > { %v1786_v26 = vpop.f32.mrf.mxu0 }
 0x141   : > { %v702_v27 = vpop.f32.mrf.mxu0 }
 0x142   : > { %v703_v36 = vadd.f32 %v702_v27, %v1755_v32 }
 0x143   : > { %v704_v52 = vpop.f32.mrf.mxu0 }
 0x144   : > { %v864_v56 = vadd.f32 %v863_v43, %v703_v36  ;;  %v705_v55 = vadd.f32 %v704_v52, %v1755_v32  ;;  %v1266_v43 = vpop.eup %1265 }
 0x145   : > { %v708_v6 = vpop.f32.mrf.mxu0  ;;  %v1268_v41 = vpop.eup %1267  ;;  %v935_v7 = vmul.f32 0.5, %v1266_v43 }
 0x146   : > { %1283 = vtanh.f32 %v864_v56  ;;  %v866_v57 = vadd.f32 %v865_v39, %v705_v55  ;;  %v709_v59 = vadd.f32 %v708_v6, %v1764_v4  ;;  %v1270_v63 = vpop.eup %1269  ;;  %v936_v29 = vmul.f32 0.5, %v1268_v41 }
 0x147   : > { %1285 = vtanh.f32 %v924_v53  ;;  %v710_v32 = vpop.f32.mrf.mxu0  ;;  %v1272_v1 = vpop.eup %1271  ;;  %v943_v52 = vadd.f32 0.5, %v935_v7  ;;  %v906_v54 = vmul.f32 0.5, %v1270_v63 }
 0x148   : > { %1287 = vtanh.f32 %v866_v57  ;;  %v870_v39 = vadd.f32 %v869_v23, %v709_v59  ;;  %v711_v40 = vadd.f32 %v710_v32, %v1764_v4  ;;  %v691_v23 = vadd.f32 %v1773_v11, %v537_v14  ;;  %v1813_v28 = vpop.eup %1273  ;;  %v991_v57 = vld [vmem:[%s1821_s6 + $0x8] sm:$0xff] }
 0x149   : > { %1289 = vtanh.f32 %v925_v2  ;;  %v714_v61 = vpop.f32.mrf.mxu0  ;;  %v848_v4 = vadd.f32 %v1747_v3, %v687_v38  ;;  %v1815_v11 = vadd.f32 0.5, %v905_v18  ;;  %v542_v3 = vpop.permute.xlu1 %541  ;;  %v944_v2 = vadd.f32 0.5, %v936_v29 }
 0x14a   : > { %1291 = vtanh.f32 %v870_v39  ;;  %v715_v19 = vadd.f32 %v714_v61, %v1767_v44  ;;  %v872_v24 = vadd.f32 %v871_v37, %v711_v40  ;;  %v1276_v36 = vpop.eup %1275  ;;  %v852_v37 = vadd.f32 %v1749_v9, %v691_v23  ;;  %v993_v23 = vld [vmem:[%s1821_s6 + $0x18] sm:$0xff] }
 0x14b   : > { %v716_v49 = vpop.f32.mrf.mxu0  ;;  %1293 = vtanh.f32 %v950_v12  ;;  %v697_v48 = vadd.f32 %v1783_v47, %v542_v3  ;;  %v1278_v50 = vpop.eup %1277  ;;  %v953_v33 = vmul.f32 0.5, %v848_v4  ;;  %v992_v47 = vld [vmem:[%s1821_s6 + $0x10] sm:$0xff]  ;;  %v937_v59 = vmul.f32 0.5, %v1276_v36 }
 0x14c   : > { %v876_v22 = vadd.f32 %v875_v45, %v715_v19  ;;  %v717_v42 = vadd.f32 %v716_v49, %v1767_v44  ;;  %1295 = vtanh.f32 %v872_v24  ;;  %v1826_v55 = vpop.eup %1279  ;;  %v699_v45 = vadd.f32 %v1786_v26, %v542_v3 }
 0x14d   : > { %v720_v27 = vpop.f32.mrf.mxu0  ;;  %v1282_v9 = vpop.eup %1281  ;;  %v938_v32 = vmul.f32 0.5, %v1278_v50  ;;  %v954_v43 = vmul.f32 0.5, %v852_v37  ;;  %v858_v12 = vadd.f32 %v1753_v25, %v697_v48  ;;  %v907_v16 = vmul.f32 0.5, %v1272_v1  ;;  %v996_v50 = vld [vmem:[%s1821_s6 + $0x30] sm:$0xff] }
 0x14e   : > { %1297 = vtanh.f32 %v876_v22  ;;  %v878_v44 = vadd.f32 %v877_v20, %v717_v42  ;;  %v721_v31 = vadd.f32 %v720_v27, %v1780_v8  ;;  %v998_v39 = vmul.f32 %v990_v0, %v942_v17  ;;  %v994_v42 = vld [vmem:[%s1821_s6 + $0x20] sm:$0xff] }
 0x14f   : > { %1299 = vtanh.f32 %v951_v21  ;;  %v722_v53 = vpop.f32.mrf.mxu0  ;;  %v999_v26 = vmul.f32 %v991_v57, %v943_v52  ;;  %v1000_v40 = vmul.f32 %v992_v47, %v944_v2  ;;  %v955_v61 = vmul.f32 0.5, %v854_v5 }
 0x150   : > { %1301 = vtanh.f32 %v878_v44  ;;  %v882_v56 = vadd.f32 %v881_v34, %v721_v31  ;;  %v723_v6 = vadd.f32 %v722_v53, %v1780_v8  ;;  %v939_v41 = vmul.f32 0.5, %v1282_v9  ;;  %v995_v44 = vld [vmem:[%s1821_s6 + $0x28] sm:$0xff] }
 0x151   : > { %1303 = vtanh.f32 %v952_v30  ;;  %v860_v18 = vadd.f32 %v1757_v35, %v699_v45  ;;  %v945_v20 = vadd.f32 0.5, %v937_v59  ;;  %v946_v7 = vadd.f32 0.5, %v938_v32 }
 0x152   : > { %1305 = vtanh.f32 %v882_v56  ;;  %v884_v38 = vadd.f32 %v883_v46, %v723_v6  ;;  %v956_v21 = vmul.f32 0.5, %v858_v12  ;;  %v914_v35 = vadd.f32 0.5, %v906_v54  ;;  %v997_v54 = vld [vmem:[%s1821_s6 + $0x38] sm:$0xff] }
 0x153   : > { %v1284_v58 = vpop.eup %1283  ;;  %1307 = vtanh.f32 %v953_v33  ;;  %v915_v22 = vadd.f32 0.5, %v907_v16  ;;  %v947_v29 = vadd.f32 0.5, %v939_v41  ;;  %v957_v30 = vmul.f32 0.5, %v860_v18 }
 0x154   : > { %v1286_v14 = vpop.eup %1285  ;;  %v1006_v8 = vmul.f32 %v1284_v58, %v1795_v62  ;;  %1309 = vtanh.f32 %v884_v38  ;;  %v1001_v3 = vmul.f32 %v993_v23, %v945_v20  ;;  %v1002_v36 = vmul.f32 %v994_v42, %v946_v7 }
 0x155   : > { %v1288_v15 = vpop.eup %1287  ;;  %1311 = vtanh.f32 %v954_v43  ;;  %v940_v24 = vmul.f32 0.5, %v1286_v14  ;;  %v909_v53 = vmul.f32 0.5, %v1826_v55  ;;  %v1003_v56 = vmul.f32 %v995_v44, %v947_v29 }
 0x156   : > { %v1290_v25 = vpop.eup %1289  ;;  %v1014_v60 = vadd.f32 %v1006_v8, %v998_v39  ;;  %v1007_v19 = vmul.f32 %v1288_v15, %v1797_v10  ;;  %v908_v10 = vmul.f32 0.5, %v1813_v28 }
 0x157   : > { %v1292_v62 = vpop.eup %1291  ;;  %v941_v31 = vmul.f32 0.5, %v1290_v25  ;;  %v948_v28 = vadd.f32 0.5, %v940_v24  ;;  %v917_v59 = vadd.f32 0.5, %v909_v53 }
 0x158   : > { %1313 = vtanh.f32 %v1014_v60  ;;  %1046 = vst [vmem:[%s1840_s9] sm:$0xff] %v1014_v60  ;;  %v1015_v49 = vadd.f32 %v1007_v19, %v999_v26  ;;  %v1008_v63 = vmul.f32 %v1292_v62, %v1801_v13  ;;  %v1294_v4 = vpop.eup %1293  ;;  %v916_v48 = vadd.f32 0.5, %v908_v10 }
 0x159   : > { %1315 = vtanh.f32 %v955_v61  ;;  %v1296_v1 = vpop.eup %1295  ;;  %v949_v5 = vadd.f32 0.5, %v941_v31  ;;  %v966_v6 = vmul.f32 0.5, %v1294_v4  ;;  %v1004_v9 = vmul.f32 %v996_v50, %v948_v28 }
 0x15a   : > { %1317 = vtanh.f32 %v1015_v49  ;;  %1047 = vst [vmem:[%s1840_s9 + $0x8] sm:$0xff] %v1015_v49  ;;  %v1016_v51 = vadd.f32 %v1008_v63, %v1000_v40  ;;  %v1009_v13 = vmul.f32 %v1296_v1, %v1815_v11 }
 0x15b   : > { %v1298_v27 = vpop.eup %1297  ;;  %1319 = vtanh.f32 %v956_v21  ;;  %v1005_v32 = vmul.f32 %v997_v54, %v949_v5  ;;  %v974_v38 = vadd.f32 0.5, %v966_v6 }
 0x15c   : > { %v1300_v34 = vpop.eup %1299  ;;  %1321 = vtanh.f32 %v1016_v51  ;;  %1048 = vst [vmem:[%s1840_s9 + $0x10] sm:$0xff] %v1016_v51  ;;  %v1010_v17 = vmul.f32 %v1298_v27, %v914_v35  ;;  %v1017_v52 = vadd.f32 %v1009_v13, %v1001_v3 }
 0x15d   : > { %v1302_v37 = vpop.eup %1301  ;;  %1323 = vtanh.f32 %v957_v30  ;;  %v967_v46 = vmul.f32 0.5, %v1300_v34 }
 0x15e   : > { %v1304_v33 = vpop.eup %1303  ;;  %v1018_v0 = vadd.f32 %v1010_v17, %v1002_v36  ;;  %v1011_v11 = vmul.f32 %v1302_v37, %v915_v22  ;;  %1325 = vtanh.f32 %v1017_v52  ;;  %1049 = vst [vmem:[%s1840_s9 + $0x18] sm:$0xff] %v1017_v52 }
 0x15f   : > { %v1306_v2 = vpop.eup %1305  ;;  %v968_v14 = vmul.f32 0.5, %v1304_v33  ;;  %v975_v15 = vadd.f32 0.5, %v967_v46 }
 0x160   : > { %1327 = vtanh.f32 %v1018_v0  ;;  %1050 = vst [vmem:[%s1840_s9 + $0x20] sm:$0xff] %v1018_v0  ;;  %v1019_v55 = vadd.f32 %v1011_v11, %v1003_v56  ;;  %v1012_v57 = vmul.f32 %v1306_v2, %v916_v48  ;;  %v1308_v47 = vpop.eup %1307 }
 0x161   : > { %v1310_v45 = vpop.eup %1309  ;;  %v969_v61 = vmul.f32 0.5, %v1308_v47  ;;  %v976_v41 = vadd.f32 0.5, %v968_v14 }
 0x162   : > { %1329 = vtanh.f32 %v1019_v55  ;;  %1051 = vst [vmem:[%s1840_s9 + $0x28] sm:$0xff] %v1019_v55  ;;  %v1020_v58 = vadd.f32 %v1012_v57, %v1004_v9  ;;  %v1013_v43 = vmul.f32 %v1310_v45, %v917_v59  ;;  %v1312_v12 = vpop.eup %1311 }
 0x163   : > { %v970_v18 = vmul.f32 0.5, %v1312_v12  ;;  %v977_v21 = vadd.f32 0.5, %v969_v61 }
 0x164   : > { %1331 = vtanh.f32 %v1020_v58  ;;  %1052 = vst [vmem:[%s1840_s9 + $0x30] sm:$0xff] %v1020_v58  ;;  %v1021_v39 = vadd.f32 %v1013_v43, %v1005_v32 }
 0x165   : > { %v1314_v16 = vpop.eup %1313  ;;  %v978_v24 = vadd.f32 0.5, %v970_v18 }
 0x166   : > { %v1316_v8 = vpop.eup %1315  ;;  %v1030_v26 = vmul.f32 %v1314_v16, %v974_v38  ;;  %1333 = vtanh.f32 %v1021_v39  ;;  %1053 = vst [vmem:[%s1840_s9 + $0x38] sm:$0xff] %v1021_v39 }
 0x167   : > { %v1318_v40 = vpop.eup %1317  ;;  %v971_v62 = vmul.f32 0.5, %v1316_v8 }
 0x168   : > { %v1320_v25 = vpop.eup %1319  ;;  %1038 = vst [vmem:[%s1864_s12] sm:$0xff] %v1030_v26  ;;  %v1031_v60 = vmul.f32 %v1318_v40, %v975_v15 }
 0x169   : > { %v1322_v19 = vpop.eup %1321  ;;  %v972_v49 = vmul.f32 0.5, %v1320_v25  ;;  %v979_v35 = vadd.f32 0.5, %v971_v62 }
 0x16a   : > { %1039 = vst [vmem:[%s1864_s12 + $0x8] sm:$0xff] %v1031_v60  ;;  %v1032_v20 = vmul.f32 %v1322_v19, %v976_v41  ;;  %v1324_v7 = vpop.eup %1323 }
 0x16b   : > { %v1326_v23 = vpop.eup %1325  ;;  %v973_v42 = vmul.f32 0.5, %v1324_v7  ;;  %v980_v1 = vadd.f32 0.5, %v972_v49 }
 0x16c   : > { %1040 = vst [vmem:[%s1864_s12 + $0x10] sm:$0xff] %v1032_v20  ;;  %v1033_v4 = vmul.f32 %v1326_v23, %v977_v21 }
 0x16d   : > { %v1328_v63 = vpop.eup %1327  ;;  %v981_v27 = vadd.f32 0.5, %v973_v42 }
 0x16e   : > { %v1034_v22 = vmul.f32 %v1328_v63, %v978_v24  ;;  %1041 = vst [vmem:[%s1864_s12 + $0x18] sm:$0xff] %v1033_v4 }
 0x16f   : > { %v1330_v10 = vpop.eup %1329 }
 0x170   : > { %1042 = vst [vmem:[%s1864_s12 + $0x20] sm:$0xff] %v1034_v22  ;;  %v1035_v29 = vmul.f32 %v1330_v10, %v979_v35 }
 0x171   : > { %v1332_v30 = vpop.eup %1331 }
 0x172   : > { %1043 = vst [vmem:[%s1864_s12 + $0x28] sm:$0xff] %v1035_v29  ;;  %v1036_v51 = vmul.f32 %v1332_v30, %v980_v1 }
 0x173   : > { %v1334_v3 = vpop.eup %1333 }
 0x174   : > { %1044 = vst [vmem:[%s1864_s12 + $0x30] sm:$0xff] %v1036_v51  ;;  %v1037_v44 = vmul.f32 %v1334_v3, %v981_v27 }
 0x176   : > { %1045 = vst [vmem:[%s1864_s12 + $0x38] sm:$0xff] %v1037_v44 }
 0x177 PF: > { %s16_s20 = sadd.s32 1, %s1357_s20   ;;  %s1890_s18 = smov %s1353_s19 }
 0x178   : > { %p13_p5 = scmp.ge.s32.totalorder %s16_s20, 4   ;;  %s1891_s19 = smov %s1893_s21 }
 0x17a   :  { %15 = sbr.rel (!%p13_p5) target bundleno = 2 (0x2), region = 81 }

// kernel: conv_lstm_forward.15
= control target key start
LH: loop header
LB: loop body
LE: loop exit
PB: predicated region body
PF: predicated region fallthrough
CT: control target
= control target key end

     0   :  { %11 = vsyncpa [#allocation3], 0  ;;  %s2062_s0 = inlined_call_operand.vmem [shape: f32[2,384,256], index: 0, kind: input, shape index: {}]   ;;  %s2063_s1 = inlined_call_operand.vmem [shape: f32[128,384], index: 1, kind: input, shape index: {}]   ;;  %s2064_s2 = inlined_call_operand.vmem [shape: f32[128,1], index: 2, kind: input, shape index: {}]   ;;  %s2065_s3 = inlined_call_operand.vmem [shape: f32[2,32,256], index: 3, kind: input, shape index: {}]   ;;  %s2066_s4 = inlined_call_operand.vmem [shape: f32[2,32,256], index: 4, kind: output, shape index: {0}]   ;;  %s2067_s5 = inlined_call_operand.hbm [shape: f32[2,32,256], index: 5, kind: output, shape index: {1}]  }
   0x1   :  { %13 = vsyncpa [#allocation3 + $0x1], 0  ;;  %s1481_s18 = smov 0   ;;  %s1483_s19 = smov 0  }
   0x2   :  { %s1485_s20 = smov 0   ;;  %s1487_s21 = smov 0  }
   0x3   :  { %s1489_s22 = smov 0   ;;  %s1491_s23 = smov 0  }
   0x4 LB: > { %s1207_s24 = sadd.s32 4294967295, %s1444_s23   ;;  %s1208_s25 = sadd.s32 4294967294, %s1444_s23   ;;  %s1444_s23 = sphi %s1491_s23, %s19_s23   ;;  %s1440_s22 = sphi %s1489_s22, %s2074_s22   ;;  %s1436_s21 = sphi %s1487_s21, %s2073_s21   ;;  %s1432_s20 = sphi %s1485_s20, %s2072_s20   ;;  %s1428_s19 = sphi %s1483_s19, %s2071_s19   ;;  %s1424_s18 = sphi %s1481_s18, %s2070_s18  }
   0x5   : > { %s31_s26 = sadd.s32 1, %s1440_s22  ;;  %s166_s27 = sadd.s32 1, %s1432_s20 }
   0x6   : > { %p33_p0 = scmp.ge.s32.totalorder %s31_s26, 2  ;;  %p176_p1 = scmp.ne.s32.totalorder %s1432_s20, %s1428_s19 }
   0x7   : > { %p177_p2 = scmp.eq.s32.totalorder %s1207_s24, 1  ;;  %p182_p3 = scmp.ne.s32.totalorder %s1428_s19, %s1424_s18 }
   0x8   : > { %s2076_s26 = smov (%p33_p0, %s31_s26), 0  ;;  %p183_p5 = scmp.eq.s32.totalorder %s1208_s25, 1 }
   0x9   : > { %p1521_p4 = por %p177_p2, %p176_p1  ;;  %s161_s29 = ssub.s32 %s1440_s22, %s2076_s26 }
   0xa   : > { %p1211_p6 = scmp.ge.s32.totalorder %s1444_s23, 1  ;;  %p164_p7 = scmp.eq.s32.totalorder %s161_s29, 0 }
   0xb   : > { %p1528_p8 = por %p183_p5, %p182_p3  ;;  %p233_p9 = scmp.lt.s32.totalorder %s1444_s23, 3 }
   0xc   : > { %s1534_s6 = scalar_select %p164_p7, %s1432_s20, %s166_s27  }
   0xd   : > { %p234_p10 = pnand %p1211_p6, %p233_p9 }
   0xe   : > { %p284_p11 = scmp.lt.s32.totalorder (!%p234_p10), %s1436_s21, 1  ;;  %s280_s27 = sand.u32 (!%p234_p10), 1, %s1428_s19  }
   0xf   : > { %237 = sbr.rel (%p234_p10) target bundleno = 391 (0x187), region = 36  ;;  %s1965_s29 = sshll.u32 (!%p234_p10), %s280_s27, 6 }
  0x10   : > { %s1973_s7 = scalar_lea.vmem (!%p234_p10), [#allocation2], %s1965_s29  ;;  %s1225_s8 = sshll.u32 (!%p234_p10), %s1436_s21, 10 }
  0x11   : > { %s2002_s15 = scalar_lea.hbm (!%p234_p10), %s2067_s5, %s1225_s8  ;;  %s1448_s17 = smov (!%p234_p10), [#allocation2]  }
  0x12   : > { %s1372_s24 = sshll.u32 (!%p234_p10), %s1448_s17, 4  ;;  %s1373_s24 = int_to_ptr.vmem [resolvable:$false] %s1372_s24 }
  0x14   : > { %v411_v0 = vld [vmem:[%s2063_s1 + $0x8] sm:$0xff]  ;;  %v1446_v1 = vmov 0.0   ;;  %s1542_s9 = scalar_select %p284_p11, %s1436_s21, 1  ;;  %v1447_v2 = vmov 0  }
  0x15   : > { %618 = vmatprep.mubr.f32.mxu0 %v411_v0  ;;  %779 = vmatprep.mubr.f32.mxu1 %v1446_v1 }
  0x16   : > { %s1226_s10 = smul.u32 768, %s1542_s9  ;;  %1286 = vset.pattern.permute.xlu0 %v1447_v2  ;;  %1287 = vset.pattern.permute.xlu1 %v1447_v2  ;;  %s1223_s16 = sshll.u32 %s1542_s9, 6 }
  0x17   : > { %s1949_s25 = scalar_lea.vmem %s2065_s3, %s1223_s16  ;;  %s1996_s12 = scalar_lea.vmem %s2066_s4, %s1223_s16 }
  0x18   : > { %s1548_s13 = scalar_lea.vmem %s2062_s0, %s1226_s10  ;;  %s1073_s10 = sshll.u32 %s1973_s7, 4  ;;  %s2004_s10 = int_to_ptr.vmem [resolvable:$true] %s1073_s10 }
  0x19   : > { %v345_v3 = vld [vmem:[%s1548_s13 + $0xf8] sm:$0xff]  ;;  %v344_v4 = vld [vmem:[%s1548_s13 + $0xf0] sm:$0xff]  ;;  %v343_v5 = vld [vmem:[%s1548_s13 + $0xe8] sm:$0xff]  ;;  %s2010_s9 = scalar_lea.sflag [#allocation3], %s280_s27  ;;  %s1368_s16 = scalar_lea.vmem %s2004_s10, 1024 }
  0x1a   : > { %554 = vmatprep.subr.mxu0 %v345_v3  ;;  %v342_v6 = vld [vmem:[%s1548_s13 + $0xe0] sm:$0xff]  ;;  %v341_v7 = vld [vmem:[%s1548_s13 + $0xd8] sm:$0xff]  ;;  %v340_v8 = vld [vmem:[%s1548_s13 + $0xd0] sm:$0xff]  ;;  %p1369_p12 = scmp.ne.s32.totalorder %s2004_s10, %s1368_s16  ;;  %p1375_p1 = scmp.lt.s32.totalorder %s2004_s10, %s1373_s24 }
  0x1b   : > { %555 = vmatpush1.msra.mxu0 %v344_v4  ;;  %v339_v9 = vld [vmem:[%s1548_s13 + $0xc8] sm:$0xff]  ;;  %v338_v10 = vld [vmem:[%s1548_s13 + $0xc0] sm:$0xff]  ;;  %v337_v11 = vld [vmem:[%s1548_s13 + $0xb8] sm:$0xff] }
  0x1c   : > { %556 = vmatprep.subr.mxu0 %v343_v5  ;;  %v336_v12 = vld [vmem:[%s1548_s13 + $0xb0] sm:$0xff]  ;;  %v335_v13 = vld [vmem:[%s1548_s13 + $0xa8] sm:$0xff]  ;;  %v334_v14 = vld [vmem:[%s1548_s13 + $0xa0] sm:$0xff]  ;;  %p1370_p13 = pnand %p1369_p12, %p1521_p4 }
  0x1d   : > { %557 = vmatpush1.msra.mxu0 %v342_v6  ;;  %v333_v15 = vld [vmem:[%s1548_s13 + $0x98] sm:$0xff]  ;;  %v332_v16 = vld [vmem:[%s1548_s13 + $0x90] sm:$0xff]  ;;  %v331_v19 = vld [vmem:[%s1548_s13 + $0x88] sm:$0xff] }
  0x1e   : > { %558 = vmatprep.subr.mxu0 %v341_v7  ;;  %v409_v17 = vld [vmem:[%s1548_s13 + $0x2f8] sm:$0xff]  ;;  %v408_v18 = vld [vmem:[%s1548_s13 + $0x2f0] sm:$0xff]  ;;  %v407_v20 = vld [vmem:[%s1548_s13 + $0x2e8] sm:$0xff]  ;;  %p1371_p0 = pneg %p1370_p13 }
  0x1f   : > { %559 = vmatpush1.msra.mxu0 %v340_v8  ;;  %715 = vmatprep.subr.mxu1 %v409_v17  ;;  %v330_v21 = vld [vmem:[%s1548_s13 + $0x80] sm:$0xff]  ;;  %v405_v23 = vld [vmem:[%s1548_s13 + $0x2d8] sm:$0xff]  ;;  %v404_v25 = vld [vmem:[%s1548_s13 + $0x2d0] sm:$0xff] }
  0x20   : > { %560 = vmatprep.subr.mxu0 %v339_v9  ;;  %716 = vmatpush1.msra.mxu1 %v408_v18  ;;  %v406_v22 = vld [vmem:[%s1548_s13 + $0x2e0] sm:$0xff]  ;;  %v329_v24 = vld [vmem:[%s1548_s13 + $0x78] sm:$0xff]  ;;  %v328_v26 = vld [vmem:[%s1548_s13 + $0x70] sm:$0xff] }
  0x21   : > { %561 = vmatpush1.msra.mxu0 %v338_v10  ;;  %717 = vmatprep.subr.mxu1 %v407_v20  ;;  %v403_v27 = vld [vmem:[%s1548_s13 + $0x2c8] sm:$0xff]  ;;  %v402_v29 = vld [vmem:[%s1548_s13 + $0x2c0] sm:$0xff]  ;;  %v401_v31 = vld [vmem:[%s1548_s13 + $0x2b8] sm:$0xff] }
  0x22   : > { %562 = vmatprep.subr.mxu0 %v337_v11  ;;  %718 = vmatpush1.msra.mxu1 %v406_v22  ;;  %v327_v28 = vld [vmem:[%s1548_s13 + $0x68] sm:$0xff]  ;;  %v326_v30 = vld [vmem:[%s1548_s13 + $0x60] sm:$0xff]  ;;  %v325_v32 = vld [vmem:[%s1548_s13 + $0x58] sm:$0xff] }
  0x23   : > { %563 = vmatpush1.msra.mxu0 %v336_v12  ;;  %719 = vmatprep.subr.mxu1 %v405_v23  ;;  %v400_v33 = vld [vmem:[%s1548_s13 + $0x2b0] sm:$0xff]  ;;  %v399_v35 = vld [vmem:[%s1548_s13 + $0x2a8] sm:$0xff]  ;;  %v398_v37 = vld [vmem:[%s1548_s13 + $0x2a0] sm:$0xff] }
  0x24   : > { %564 = vmatprep.subr.mxu0 %v335_v13  ;;  %720 = vmatpush1.msra.mxu1 %v404_v25  ;;  %v324_v34 = vld [vmem:[%s1548_s13 + $0x50] sm:$0xff]  ;;  %v323_v36 = vld [vmem:[%s1548_s13 + $0x48] sm:$0xff]  ;;  %v322_v38 = vld [vmem:[%s1548_s13 + $0x40] sm:$0xff] }
  0x25   : > { %565 = vmatpush1.msra.mxu0 %v334_v14  ;;  %721 = vmatprep.subr.mxu1 %v403_v27  ;;  %v397_v39 = vld [vmem:[%s1548_s13 + $0x298] sm:$0xff]  ;;  %v396_v41 = vld [vmem:[%s1548_s13 + $0x290] sm:$0xff]  ;;  %v395_v43 = vld [vmem:[%s1548_s13 + $0x288] sm:$0xff] }
  0x26   : > { %566 = vmatprep.subr.mxu0 %v333_v15  ;;  %722 = vmatpush1.msra.mxu1 %v402_v29  ;;  %v321_v40 = vld [vmem:[%s1548_s13 + $0x38] sm:$0xff]  ;;  %v320_v42 = vld [vmem:[%s1548_s13 + $0x30] sm:$0xff]  ;;  %v319_v44 = vld [vmem:[%s1548_s13 + $0x28] sm:$0xff] }
  0x27   : > { %567 = vmatpush1.msra.mxu0 %v332_v16  ;;  %723 = vmatprep.subr.mxu1 %v401_v31  ;;  %v394_v45 = vld [vmem:[%s1548_s13 + $0x280] sm:$0xff]  ;;  %v393_v47 = vld [vmem:[%s1548_s13 + $0x278] sm:$0xff]  ;;  %v392_v49 = vld [vmem:[%s1548_s13 + $0x270] sm:$0xff] }
  0x28   : > { %568 = vmatprep.subr.mxu0 %v331_v19  ;;  %724 = vmatpush1.msra.mxu1 %v400_v33  ;;  %v318_v46 = vld [vmem:[%s1548_s13 + $0x20] sm:$0xff]  ;;  %v317_v48 = vld [vmem:[%s1548_s13 + $0x18] sm:$0xff]  ;;  %v316_v50 = vld [vmem:[%s1548_s13 + $0x10] sm:$0xff] }
  0x29   : > { %569 = vmatpush1.msra.mxu0 %v330_v21  ;;  %725 = vmatprep.subr.mxu1 %v399_v35  ;;  %v391_v51 = vld [vmem:[%s1548_s13 + $0x268] sm:$0xff]  ;;  %v390_v53 = vld [vmem:[%s1548_s13 + $0x260] sm:$0xff]  ;;  %v389_v55 = vld [vmem:[%s1548_s13 + $0x258] sm:$0xff] }
  0x2a   : > { %570 = vmatprep.subr.mxu0 %v329_v24  ;;  %726 = vmatpush1.msra.mxu1 %v398_v37  ;;  %v315_v52 = vld [vmem:[%s1548_s13 + $0x8] sm:$0xff]  ;;  %v314_v54 = vld [vmem:[%s1548_s13] sm:$0xff]  ;;  %v377_v56 = vld [vmem:[%s1548_s13 + $0x1f8] sm:$0xff] }
  0x2b   : > { %571 = vmatpush1.msra.mxu0 %v328_v26  ;;  %727 = vmatprep.subr.mxu1 %v397_v39  ;;  %v388_v57 = vld [vmem:[%s1548_s13 + $0x250] sm:$0xff]  ;;  %v387_v59 = vld [vmem:[%s1548_s13 + $0x248] sm:$0xff]  ;;  %v386_v61 = vld [vmem:[%s1548_s13 + $0x240] sm:$0xff] }
  0x2c   : > { %572 = vmatprep.subr.mxu0 %v327_v28  ;;  %728 = vmatpush1.msra.mxu1 %v396_v41  ;;  %v376_v58 = vld [vmem:[%s1548_s13 + $0x1f0] sm:$0xff]  ;;  %v375_v60 = vld [vmem:[%s1548_s13 + $0x1e8] sm:$0xff]  ;;  %v374_v62 = vld [vmem:[%s1548_s13 + $0x1e0] sm:$0xff] }
  0x2d   : > { %573 = vmatpush1.msra.mxu0 %v326_v30  ;;  %729 = vmatprep.subr.mxu1 %v395_v43  ;;  %v385_v63 = vld [vmem:[%s1548_s13 + $0x238] sm:$0xff]  ;;  %v384_v2 = vld [vmem:[%s1548_s13 + $0x230] sm:$0xff]  ;;  %v383_v4 = vld [vmem:[%s1548_s13 + $0x228] sm:$0xff] }
  0x2e   : > { %574 = vmatprep.subr.mxu0 %v325_v32  ;;  %730 = vmatpush1.msra.mxu1 %v394_v45  ;;  %v373_v0 = vld [vmem:[%s1548_s13 + $0x1d8] sm:$0xff]  ;;  %v372_v3 = vld [vmem:[%s1548_s13 + $0x1d0] sm:$0xff]  ;;  %v371_v5 = vld [vmem:[%s1548_s13 + $0x1c8] sm:$0xff] }
  0x2f   : > { %575 = vmatpush1.msra.mxu0 %v324_v34  ;;  %731 = vmatprep.subr.mxu1 %v393_v47  ;;  %v382_v6 = vld [vmem:[%s1548_s13 + $0x220] sm:$0xff]  ;;  %v381_v8 = vld [vmem:[%s1548_s13 + $0x218] sm:$0xff]  ;;  %v380_v10 = vld [vmem:[%s1548_s13 + $0x210] sm:$0xff] }
  0x30   : > { %576 = vmatprep.subr.mxu0 %v323_v36  ;;  %732 = vmatpush1.msra.mxu1 %v392_v49  ;;  %v370_v7 = vld [vmem:[%s1548_s13 + $0x1c0] sm:$0xff]  ;;  %v369_v9 = vld [vmem:[%s1548_s13 + $0x1b8] sm:$0xff]  ;;  %v368_v11 = vld [vmem:[%s1548_s13 + $0x1b0] sm:$0xff] }
  0x31   : > { %577 = vmatpush1.msra.mxu0 %v322_v38  ;;  %733 = vmatprep.subr.mxu1 %v391_v51  ;;  %v379_v12 = vld [vmem:[%s1548_s13 + $0x208] sm:$0xff]  ;;  %v378_v14 = vld [vmem:[%s1548_s13 + $0x200] sm:$0xff]  ;;  %v412_v16 = vld [vmem:[%s2063_s1 + $0x10] sm:$0xff] }
  0x32   : > { %578 = vmatprep.subr.mxu0 %v321_v40  ;;  %734 = vmatpush1.msra.mxu1 %v390_v53  ;;  %v367_v13 = vld [vmem:[%s1548_s13 + $0x1a8] sm:$0xff]  ;;  %v366_v15 = vld [vmem:[%s1548_s13 + $0x1a0] sm:$0xff]  ;;  %v365_v17 = vld [vmem:[%s1548_s13 + $0x198] sm:$0xff] }
  0x33   : > { %579 = vmatpush1.msra.mxu0 %v320_v42  ;;  %735 = vmatprep.subr.mxu1 %v389_v55  ;;  %v364_v18 = vld [vmem:[%s1548_s13 + $0x190] sm:$0xff]  ;;  %v458_v19 = vld [vmem:[%s2064_s2] sm:$0xff]  ;;  %v363_v20 = vld [vmem:[%s1548_s13 + $0x188] sm:$0xff] }
  0x34   : > { %580 = vmatprep.subr.mxu0 %v319_v44  ;;  %736 = vmatpush1.msra.mxu1 %v388_v57  ;;  %v460_v21 = vld [vmem:[%s2064_s2 + $0x10] sm:$0xff]  ;;  %v362_v22 = vld [vmem:[%s1548_s13 + $0x180] sm:$0xff]  ;;  %v415_v23 = vld [vmem:[%s2063_s1 + $0x28] sm:$0xff] }
  0x35   : > { %581 = vmatpush1.msra.mxu0 %v318_v46  ;;  %737 = vmatprep.subr.mxu1 %v387_v59  ;;  %v361_v24 = vld [vmem:[%s1548_s13 + $0x178] sm:$0xff]  ;;  %v360_v25 = vld [vmem:[%s1548_s13 + $0x170] sm:$0xff]  ;;  %v459_v26 = vld [vmem:[%s2064_s2 + $0x8] sm:$0xff] }
  0x36   : > { %582 = vmatprep.subr.mxu0 %v317_v48  ;;  %738 = vmatpush1.msra.mxu1 %v386_v61  ;;  %v359_v27 = vld [vmem:[%s1548_s13 + $0x168] sm:$0xff]  ;;  %v461_v28 = vld [vmem:[%s2064_s2 + $0x18] sm:$0xff]  ;;  %v358_v29 = vld [vmem:[%s1548_s13 + $0x160] sm:$0xff] }
  0x37   : > { %583 = vmatpush1.msra.mxu0 %v316_v50  ;;  %739 = vmatprep.subr.mxu1 %v385_v63  ;;  %v418_v30 = vld [vmem:[%s2063_s1 + $0x40] sm:$0xff]  ;;  %v357_v31 = vld [vmem:[%s1548_s13 + $0x158] sm:$0xff]  ;;  %v356_v32 = vld [vmem:[%s1548_s13 + $0x150] sm:$0xff] }
  0x38   : > { %584 = vmatprep.subr.mxu0 %v315_v52  ;;  %740 = vmatpush1.msra.mxu1 %v384_v2  ;;  %v462_v33 = vld [vmem:[%s2064_s2 + $0x20] sm:$0xff]  ;;  %v355_v34 = vld [vmem:[%s1548_s13 + $0x148] sm:$0xff]  ;;  %v421_v37 = vld [vmem:[%s2063_s1 + $0x58] sm:$0xff] }
  0x39   : > { %585 = vmatpush1.msra.mxu0 %v314_v54  ;;  %741 = vmatprep.subr.mxu1 %v383_v4  ;;  %v463_v35 = vld [vmem:[%s2064_s2 + $0x28] sm:$0xff]  ;;  %v354_v36 = vld [vmem:[%s1548_s13 + $0x140] sm:$0xff]  ;;  %v353_v38 = vld [vmem:[%s1548_s13 + $0x138] sm:$0xff] }
  0x3a   : > { %586 = vmatprep.subr.mxu0 %v377_v56  ;;  %742 = vmatpush1.msra.mxu1 %v382_v6  ;;  %v352_v39 = vld [vmem:[%s1548_s13 + $0x130] sm:$0xff]  ;;  %v351_v41 = vld [vmem:[%s1548_s13 + $0x128] sm:$0xff]  ;;  %v465_v42 = vld [vmem:[%s2064_s2 + $0x38] sm:$0xff] }
  0x3b   : > { %587 = vmatpush2.msra.mxu0 %v376_v58  ;;  %743 = vmatprep.subr.mxu1 %v381_v8  ;;  %v464_v40 = vld [vmem:[%s2064_s2 + $0x30] sm:$0xff]  ;;  %v350_v43 = vld [vmem:[%s1548_s13 + $0x120] sm:$0xff]  ;;  %v349_v45 = vld [vmem:[%s1548_s13 + $0x118] sm:$0xff] }
  0x3c   : > { %588 = vmatprep.subr.mxu0 %v375_v60  ;;  %744 = vmatpush1.msra.mxu1 %v380_v10  ;;  %v424_v44 = vld [vmem:[%s2063_s1 + $0x70] sm:$0xff]  ;;  %v470_v47 = vld [vmem:[%s2064_s2 + $0x60] sm:$0xff]  ;;  %v347_v48 = vld [vmem:[%s1548_s13 + $0x108] sm:$0xff] }
  0x3d   : > { %589 = vmatpush2.msra.mxu0 %v374_v62  ;;  %745 = vmatprep.subr.mxu1 %v379_v12  ;;  %v348_v46 = vld [vmem:[%s1548_s13 + $0x110] sm:$0xff]  ;;  %v471_v49 = vld [vmem:[%s2064_s2 + $0x68] sm:$0xff]  ;;  %v346_v50 = vld [vmem:[%s1548_s13 + $0x100] sm:$0xff] }
  0x3e   : > { %590 = vmatprep.subr.mxu0 %v373_v0  ;;  %746 = vmatpush1.msra.mxu1 %v378_v14  ;;  %v427_v51 = vld [vmem:[%s2063_s1 + $0x88] sm:$0xff]  ;;  %v410_v52 = vld [vmem:[%s2063_s1] sm:$0xff]  ;;  %v472_v54 = vld [vmem:[%s2064_s2 + $0x70] sm:$0xff] }
  0x3f   : > { %591 = vmatpush2.msra.mxu0 %v372_v3  ;;  %780 = vmatmul.mubr.f32.vlgmr.msra.gmra.mxu1 %v412_v16  ;;  %v414_v53 = vld [vmem:[%s2063_s1 + $0x20] sm:$0xff]  ;;  %v473_v55 = vld [vmem:[%s2064_s2 + $0x78] sm:$0xff]  ;;  %v467_v60 = vld [vmem:[%s2064_s2 + $0x48] sm:$0xff] }
  0x40   : > { %592 = vmatprep.subr.mxu0 %v371_v5  ;;  %785 = vmatprep.mubr.f32.mxu1 %v1446_v1  ;;  %v430_v56 = vld [vmem:[%s2063_s1 + $0xa0] sm:$0xff]  ;;  %v413_v57 = vld [vmem:[%s2063_s1 + $0x18] sm:$0xff]  ;;  %v416_v62 = vld [vmem:[%s2063_s1 + $0x30] sm:$0xff] }
  0x41   : > { %593 = vmatpush2.msra.mxu0 %v370_v7  ;;  %476 = vperm.xlu0 %1286, %v458_v19   ;;  %v417_v58 = vld [vmem:[%s2063_s1 + $0x38] sm:$0xff]  ;;  %v466_v59 = vld [vmem:[%s2064_s2 + $0x40] sm:$0xff]  ;;  %v420_v63 = vld [vmem:[%s2063_s1 + $0x50] sm:$0xff] }
  0x42   : > { %594 = vmatprep.subr.mxu0 %v369_v9  ;;  %486 = vperm.xlu1 %1287, %v460_v21   ;;  %v433_v61 = vld [vmem:[%s2063_s1 + $0xb8] sm:$0xff]  ;;  %v468_v0 = vld [vmem:[%s2064_s2 + $0x50] sm:$0xff]  ;;  %v419_v4 = vld [vmem:[%s2063_s1 + $0x48] sm:$0xff] }
  0x43   : > { %595 = vmatpush2.msra.mxu0 %v368_v11  ;;  %786 = vmatmul.mubr.f32.gmra.mxu1 %v415_v23  ;;  %v469_v2 = vld [vmem:[%s2064_s2 + $0x58] sm:$0xff]  ;;  %v436_v3 = vld [vmem:[%s2063_s1 + $0xd0] sm:$0xff]  ;;  %v423_v5 = vld [vmem:[%s2063_s1 + $0x68] sm:$0xff] }
  0x44   : > { %596 = vmatprep.subr.mxu0 %v367_v13  ;;  %791 = vmatprep.mubr.f32.mxu1 %v1446_v1  ;;  %v439_v6 = vld [vmem:[%s2063_s1 + $0xe8] sm:$0xff]  ;;  %v422_v7 = vld [vmem:[%s2063_s1 + $0x60] sm:$0xff]  ;;  %v425_v10 = vld [vmem:[%s2063_s1 + $0x78] sm:$0xff] }
  0x45   : > { %597 = vmatpush2.msra.mxu0 %v366_v15  ;;  %481 = vperm.xlu0 %1286, %v459_v26   ;;  %v426_v8 = vld [vmem:[%s2063_s1 + $0x80] sm:$0xff]  ;;  %v429_v11 = vld [vmem:[%s2063_s1 + $0x98] sm:$0xff]  ;;  %v428_v13 = vld [vmem:[%s2063_s1 + $0x90] sm:$0xff] }
  0x46   : > { %598 = vmatprep.subr.mxu0 %v365_v17  ;;  %491 = vperm.xlu1 %1287, %v461_v28   ;;  %v442_v9 = vld [vmem:[%s2063_s1 + $0x100] sm:$0xff]  ;;  %v445_v12 = vld [vmem:[%s2063_s1 + $0x118] sm:$0xff]  ;;  %v432_v14 = vld [vmem:[%s2063_s1 + $0xb0] sm:$0xff] }
  0x47   : > { %599 = vmatpush2.msra.mxu0 %v364_v18  ;;  %792 = vmatmul.mubr.f32.gmra.mxu1 %v418_v30  ;;  %v448_v15 = vld [vmem:[%s2063_s1 + $0x130] sm:$0xff]  ;;  %v431_v16 = vld [vmem:[%s2063_s1 + $0xa8] sm:$0xff]  ;;  %v434_v19 = vld [vmem:[%s2063_s1 + $0xc0] sm:$0xff] }
  0x48   : > { %600 = vmatprep.subr.mxu0 %v363_v20  ;;  %797 = vmatprep.mubr.f32.mxu1 %v1446_v1  ;;  %v435_v17 = vld [vmem:[%s2063_s1 + $0xc8] sm:$0xff]  ;;  %v438_v20 = vld [vmem:[%s2063_s1 + $0xe0] sm:$0xff]  ;;  %v441_v23 = vld [vmem:[%s2063_s1 + $0xf8] sm:$0xff] }
  0x49   : > { %601 = vmatpush2.msra.mxu0 %v362_v22  ;;  %496 = vperm.xlu0 %1286, %v462_v33   ;;  %v451_v18 = vld [vmem:[%s2063_s1 + $0x148] sm:$0xff]  ;;  %v454_v21 = vld [vmem:[%s2063_s1 + $0x160] sm:$0xff]  ;;  %v437_v22 = vld [vmem:[%s2063_s1 + $0xd8] sm:$0xff] }
  0x4a   : > { %602 = vmatprep.subr.mxu0 %v361_v24  ;;  %501 = vperm.xlu1 %1287, %v463_v35   ;;  %v457_v24 = vld [vmem:[%s2063_s1 + $0x178] sm:$0xff]  ;;  %v444_v26 = vld [vmem:[%s2063_s1 + $0x110] sm:$0xff]  ;;  %v446_v28 = vld [vmem:[%s2063_s1 + $0x120] sm:$0xff] }
  0x4b   : > { %603 = vmatpush2.msra.mxu0 %v360_v25  ;;  %798 = vmatmul.mubr.f32.gmra.mxu1 %v421_v37  ;;  %v440_v25 = vld [vmem:[%s2063_s1 + $0xf0] sm:$0xff]  ;;  %v449_v30 = vld [vmem:[%s2063_s1 + $0x138] sm:$0xff] }
  0x4c   : > { %604 = vmatprep.subr.mxu0 %v359_v27  ;;  %803 = vmatprep.mubr.f32.mxu1 %v1446_v1  ;;  %v447_v27 = vld [vmem:[%s2063_s1 + $0x128] sm:$0xff]  ;;  %v456_v33 = vld [vmem:[%s2063_s1 + $0x170] sm:$0xff] }
  0x4d   : > { %605 = vmatpush2.msra.mxu0 %v358_v29  ;;  %506 = vperm.xlu0 %1286, %v464_v40   ;;  %v450_v29 = vld [vmem:[%s2063_s1 + $0x140] sm:$0xff] }
  0x4e   : > { %606 = vmatprep.subr.mxu0 %v357_v31  ;;  %511 = vperm.xlu1 %1287, %v465_v42   ;;  %v453_v31 = vld [vmem:[%s2063_s1 + $0x158] sm:$0xff] }
  0x4f   : > { %607 = vmatpush2.msra.mxu0 %v356_v32  ;;  %804 = vmatmul.mubr.f32.gmra.mxu1 %v424_v44  ;;  %v452_v32 = vld [vmem:[%s2063_s1 + $0x150] sm:$0xff] }
  0x50   : > { %608 = vmatprep.subr.mxu0 %v355_v34  ;;  %809 = vmatprep.mubr.f32.mxu1 %v1446_v1  ;;  %v455_v34 = vld [vmem:[%s2063_s1 + $0x168] sm:$0xff] }
  0x51   : > { %609 = vmatpush2.msra.mxu0 %v354_v36  ;;  %536 = vperm.xlu0 %1286, %v470_v47  }
  0x52   : > { %610 = vmatprep.subr.mxu0 %v353_v38  ;;  %541 = vperm.xlu1 %1287, %v471_v49  }
  0x53   : > { %611 = vmatpush2.msra.mxu0 %v352_v39  ;;  %810 = vmatmul.mubr.f32.gmra.mxu1 %v427_v51 }
  0x54   : > { %612 = vmatprep.subr.mxu0 %v351_v41  ;;  %815 = vmatprep.mubr.f32.mxu1 %v1446_v1 }
  0x55   : > { %613 = vmatpush2.msra.mxu0 %v350_v43  ;;  %546 = vperm.xlu0 %1286, %v472_v54  }
  0x56   : > { %614 = vmatprep.subr.mxu0 %v349_v45  ;;  %551 = vperm.xlu1 %1287, %v473_v55  }
  0x57   : > { %615 = vmatpush2.msra.mxu0 %v348_v46  ;;  %816 = vmatmul.mubr.f32.gmra.mxu1 %v430_v56 }
  0x58   : > { %616 = vmatprep.subr.mxu0 %v347_v48  ;;  %821 = vmatprep.mubr.f32.mxu1 %v1446_v1 }
  0x59   : > { %617 = vmatpush2.msra.mxu0 %v346_v50  ;;  %516 = vperm.xlu0 %1286, %v466_v59  }
  0x5a   : > { %619 = vmatmul.mubr.f32.vlgmr.msra.gmra.mxu0 %v410_v52  ;;  %521 = vperm.xlu1 %1287, %v467_v60  }
  0x5b   : > { %624 = vmatprep.mubr.f32.mxu0 %v414_v53  ;;  %822 = vmatmul.mubr.f32.gmra.mxu1 %v433_v61 }
  0x5c   : > { %827 = vmatprep.mubr.f32.mxu1 %v1446_v1 }
  0x5d   : > { %526 = vperm.xlu0 %1286, %v468_v0  }
  0x5e   : > { %625 = vmatmul.mubr.f32.gmra.mxu0 %v413_v57  ;;  %531 = vperm.xlu1 %1287, %v469_v2  }
  0x5f   : > { %630 = vmatprep.mubr.f32.mxu0 %v417_v58  ;;  %828 = vmatmul.mubr.f32.gmra.mxu1 %v436_v3 }
  0x60   : > { %833 = vmatprep.mubr.f32.mxu1 %v1446_v1 }
  0x62   : > { %631 = vmatmul.mubr.f32.gmra.mxu0 %v416_v62 }
  0x63   : > { %636 = vmatprep.mubr.f32.mxu0 %v420_v63  ;;  %834 = vmatmul.mubr.f32.gmra.mxu1 %v439_v6 }
  0x64   : > { %839 = vmatprep.mubr.f32.mxu1 %v1446_v1 }
  0x66   : > { %637 = vmatmul.mubr.f32.gmra.mxu0 %v419_v4 }
  0x67   : > { %642 = vmatprep.mubr.f32.mxu0 %v423_v5  ;;  %840 = vmatmul.mubr.f32.gmra.mxu1 %v442_v9 }
  0x68   : > { %845 = vmatprep.mubr.f32.mxu1 %v1446_v1 }
  0x6a   : > { %643 = vmatmul.mubr.f32.gmra.mxu0 %v422_v7 }
  0x6b   : > { %648 = vmatprep.mubr.f32.mxu0 %v426_v8  ;;  %846 = vmatmul.mubr.f32.gmra.mxu1 %v445_v12 }
  0x6c   : > { %851 = vmatprep.mubr.f32.mxu1 %v1446_v1 }
  0x6e   : > { %649 = vmatmul.mubr.f32.gmra.mxu0 %v425_v10 }
  0x6f   : > { %654 = vmatprep.mubr.f32.mxu0 %v429_v11  ;;  %852 = vmatmul.mubr.f32.gmra.mxu1 %v448_v15 }
  0x70   : > { %857 = vmatprep.mubr.f32.mxu1 %v1446_v1 }
  0x72   : > { %655 = vmatmul.mubr.f32.gmra.mxu0 %v428_v13 }
  0x73   : > { %660 = vmatprep.mubr.f32.mxu0 %v432_v14  ;;  %858 = vmatmul.mubr.f32.gmra.mxu1 %v451_v18 }
  0x74   : > { %863 = vmatprep.mubr.f32.mxu1 %v1446_v1 }
  0x76   : > { %661 = vmatmul.mubr.f32.gmra.mxu0 %v431_v16 }
  0x77   : > { %666 = vmatprep.mubr.f32.mxu0 %v435_v17  ;;  %864 = vmatmul.mubr.f32.gmra.mxu1 %v454_v21 }
  0x78   : > { %869 = vmatprep.mubr.f32.mxu1 %v1446_v1  ;;  %v443_v1 = vld [vmem:[%s2063_s1 + $0x108] sm:$0xff] }
  0x7a   : > { %667 = vmatmul.mubr.f32.gmra.mxu0 %v434_v19 }
  0x7b   : > { %672 = vmatprep.mubr.f32.mxu0 %v438_v20  ;;  %870 = vmatmul.mubr.f32.gmra.mxu1 %v457_v24 }
  0x7e   : > { %673 = vmatmul.mubr.f32.gmra.mxu0 %v437_v22 }
  0x7f   : > { %678 = vmatprep.mubr.f32.mxu0 %v441_v23 }
  0x82   : > { %679 = vmatmul.mubr.f32.gmra.mxu0 %v440_v25 }
  0x83   : > { %684 = vmatprep.mubr.f32.mxu0 %v444_v26 }
  0x86   : > { %685 = vmatmul.mubr.f32.gmra.mxu0 %v443_v1 }
  0x87   : > { %690 = vmatprep.mubr.f32.mxu0 %v447_v27 }
  0x8a   : > { %691 = vmatmul.mubr.f32.gmra.mxu0 %v446_v28 }
  0x8b   : > { %696 = vmatprep.mubr.f32.mxu0 %v450_v29 }
  0x8e   : > { %697 = vmatmul.mubr.f32.gmra.mxu0 %v449_v30 }
  0x8f   : > { %702 = vmatprep.mubr.f32.mxu0 %v453_v31 }
  0x92   : > { %703 = vmatmul.mubr.f32.gmra.mxu0 %v452_v32 }
  0x93   : > { %708 = vmatprep.mubr.f32.mxu0 %v456_v33 }
  0x96   : > { %709 = vmatmul.mubr.f32.gmra.mxu0 %v455_v34 }
  0xbc   : > { %v477_v56 = vpop.permute.xlu0 %476 }
  0xbd   : > { %v487_v62 = vpop.permute.xlu1 %486 }
  0xc0   : > { %v482_v0 = vpop.permute.xlu0 %481 }
  0xc1   : > { %v492_v8 = vpop.permute.xlu1 %491 }
  0xc4   : > { %v497_v5 = vpop.permute.xlu0 %496 }
  0xc5   : > { %v502_v15 = vpop.permute.xlu1 %501 }
  0xc8   : > { %v507_v18 = vpop.permute.xlu0 %506 }
  0xc9   : > { %v512_v28 = vpop.permute.xlu1 %511 }
  0xcc   : > { %v1884_v32 = vpop.permute.xlu0 %536 }
  0xff   : > { %v781_v35 = vpop.f32.mrf.mxu1 }
 0x101   : > { %v783_v36 = vpop.f32.mrf.mxu1 }
 0x103   : > { %v787_v37 = vpop.f32.mrf.mxu1 }
 0x105   : > { %v789_v38 = vpop.f32.mrf.mxu1 }
 0x107   : > { %v1850_v39 = vpop.f32.mrf.mxu1 }
 0x109   : > { %v1852_v40 = vpop.f32.mrf.mxu1 }
 0x10b   : > { %v1854_v41 = vpop.f32.mrf.mxu1 }
 0x10d   : > { %v1856_v42 = vpop.f32.mrf.mxu1 }
 0x10f   : > { %v805_v43 = vpop.f32.mrf.mxu1 }
 0x111   : > { %v807_v44 = vpop.f32.mrf.mxu1 }
 0x113   : > { %v1858_v45 = vpop.f32.mrf.mxu1 }
 0x115   : > { %v1860_v47 = vpop.f32.mrf.mxu1 }
 0x117   : > { %v1862_v49 = vpop.f32.mrf.mxu1 }
 0x119   : > { %v1864_v51 = vpop.f32.mrf.mxu1 }
 0x11a   : > { %v620_v46 = vpop.f32.mrf.mxu0 }
 0x11b   : > { %v1866_v53 = vpop.f32.mrf.mxu1  ;;  %v621_v7 = vadd.f32 %v620_v46, %v477_v56 }
 0x11c   : > { %v622_v48 = vpop.f32.mrf.mxu0 }
 0x11d   : > { %v1868_v55 = vpop.f32.mrf.mxu1  ;;  %v623_v10 = vadd.f32 %v622_v48, %v477_v56  ;;  %v782_v14 = vadd.f32 %v781_v35, %v621_v7 }
 0x11e   : > { %v626_v50 = vpop.f32.mrf.mxu0 }
 0x11f   : > { %v1870_v58 = vpop.f32.mrf.mxu1  ;;  %v627_v12 = vadd.f32 %v626_v50, %v482_v0  ;;  %v784_v17 = vadd.f32 %v783_v36, %v623_v10  ;;  %v876_v23 = vmul.f32 0.5, %v782_v14 }
 0x120   : > { %v628_v52 = vpop.f32.mrf.mxu0 }
 0x121   : > { %v1872_v60 = vpop.f32.mrf.mxu1  ;;  %v788_v20 = vadd.f32 %v787_v37, %v627_v12  ;;  %v629_v21 = vadd.f32 %v628_v52, %v482_v0  ;;  %v877_v26 = vmul.f32 0.5, %v784_v17  ;;  %1288 = vtanh.f32 %v876_v23 }
 0x122   : > { %v632_v54 = vpop.f32.mrf.mxu0 }
 0x123   : > { %v1874_v63 = vpop.f32.mrf.mxu1  ;;  %v878_v29 = vmul.f32 0.5, %v788_v20  ;;  %v790_v30 = vadd.f32 %v789_v38, %v629_v21  ;;  %1290 = vtanh.f32 %v877_v26  ;;  %v633_v36 = vadd.f32 %v632_v54, %v487_v62 }
 0x124   : > { %v634_v57 = vpop.f32.mrf.mxu0 }
 0x125   : > { %v1876_v3 = vpop.f32.mrf.mxu1  ;;  %v635_v48 = vadd.f32 %v634_v57, %v487_v62  ;;  %1292 = vtanh.f32 %v878_v29  ;;  %v879_v50 = vmul.f32 0.5, %v790_v30 }
 0x126   : > { %v638_v59 = vpop.f32.mrf.mxu0 }
 0x127   : > { %v1878_v9 = vpop.f32.mrf.mxu1  ;;  %v639_v52 = vadd.f32 %v638_v59, %v492_v8  ;;  %v796_v57 = vadd.f32 %v1852_v40, %v635_v48  ;;  %1294 = vtanh.f32 %v879_v50 }
 0x128   : > { %v640_v61 = vpop.f32.mrf.mxu0 }
 0x129   : > { %v1880_v16 = vpop.f32.mrf.mxu1  ;;  %v641_v59 = vadd.f32 %v640_v61, %v492_v8  ;;  %v881_v40 = vmul.f32 0.5, %v796_v57 }
 0x12a   : > { %v644_v2 = vpop.f32.mrf.mxu0 }
 0x12b   : > { %v645_v24 = vadd.f32 %v644_v2, %v497_v5  ;;  %v1882_v25 = vpop.f32.mrf.mxu1  ;;  %v802_v61 = vadd.f32 %v1856_v42, %v641_v59 }
 0x12c   : > { %v646_v4 = vpop.f32.mrf.mxu0 }
 0x12d   : > { %v647_v1 = vadd.f32 %v646_v4, %v497_v5  ;;  %v806_v34 = vadd.f32 %v805_v43, %v645_v24  ;;  %v1886_v35 = vpop.f32.mrf.mxu1  ;;  %v1893_v4 = vpop.permute.xlu1 %541  ;;  %v794_v5 = vadd.f32 %v1850_v39, %v633_v36 }
 0x12e   : > { %v650_v6 = vpop.f32.mrf.mxu0  ;;  %v1289_v24 = vpop.eup %1288 }
 0x12f   : > { %v651_v31 = vadd.f32 %v650_v6, %v502_v15  ;;  %v808_v37 = vadd.f32 %v807_v44, %v647_v1  ;;  %v908_v0 = vmul.f32 0.5, %v806_v34  ;;  %v853_v43 = vpop.f32.mrf.mxu1  ;;  %v1896_v44 = vpop.permute.xlu0 %546  ;;  %v880_v14 = vmul.f32 0.5, %v794_v5 }
 0x130   : > { %v652_v11 = vpop.f32.mrf.mxu0  ;;  %v1291_v42 = vpop.eup %1290  ;;  %v883_v1 = vmul.f32 0.5, %v802_v61 }
 0x131   : > { %v812_v56 = vadd.f32 %v1858_v45, %v651_v31  ;;  %v653_v2 = vadd.f32 %v652_v11, %v502_v15  ;;  %v909_v6 = vmul.f32 0.5, %v808_v37  ;;  %v800_v45 = vadd.f32 %v1854_v41, %v639_v52  ;;  %v855_v39 = vpop.f32.mrf.mxu1  ;;  %v1909_v8 = vpop.permute.xlu1 %551 }
 0x132   : > { %v656_v13 = vpop.f32.mrf.mxu0  ;;  %1296 = vtanh.f32 %v908_v0  ;;  %v892_v31 = vmul.f32 0.5, %v1289_v24  ;;  %v893_v48 = vmul.f32 0.5, %v1291_v42 }
 0x133   : > { %v657_v54 = vadd.f32 %v656_v13, %v507_v18  ;;  %v910_v62 = vmul.f32 0.5, %v812_v56  ;;  %v814_v12 = vadd.f32 %v1860_v47, %v653_v2  ;;  %1298 = vtanh.f32 %v909_v6  ;;  %v517_v20 = vpop.permute.xlu0 %516  ;;  %v859_v23 = vpop.f32.mrf.mxu1 }
 0x134   : > { %v658_v19 = vpop.f32.mrf.mxu0  ;;  %v882_v41 = vmul.f32 0.5, %v800_v45 }
 0x135   : > { %v659_v10 = vadd.f32 %v658_v19, %v507_v18  ;;  %v818_v13 = vadd.f32 %v1862_v49, %v657_v54  ;;  %1300 = vtanh.f32 %v910_v62  ;;  %v911_v21 = vmul.f32 0.5, %v814_v12  ;;  %v522_v34 = vpop.permute.xlu1 %521  ;;  %v861_v37 = vpop.f32.mrf.mxu1 }
 0x136   : > { %v662_v22 = vpop.f32.mrf.mxu0  ;;  %1302 = vtanh.f32 %v880_v14  ;;  %v1924_v62 = vadd.f32 0.5, %v892_v31 }
 0x137   : > { %v663_v15 = vadd.f32 %v662_v22, %v512_v28  ;;  %v820_v18 = vadd.f32 %v1864_v51, %v659_v10  ;;  %v912_v49 = vmul.f32 0.5, %v818_v13  ;;  %1304 = vtanh.f32 %v881_v40  ;;  %v865_v45 = vpop.f32.mrf.mxu1  ;;  %v527_v14 = vpop.permute.xlu0 %526 }
 0x138   : > { %v664_v27 = vpop.f32.mrf.mxu0  ;;  %1306 = vtanh.f32 %v882_v41  ;;  %v1926_v10 = vadd.f32 0.5, %v893_v48 }
 0x139   : > { %v665_v19 = vadd.f32 %v664_v27, %v512_v28  ;;  %v824_v22 = vadd.f32 %v1866_v53, %v663_v15  ;;  %v913_v30 = vmul.f32 0.5, %v820_v18  ;;  %v1293_v28 = vpop.eup %1292  ;;  %1308 = vtanh.f32 %v911_v21 }
 0x13a   : > { %v668_v33 = vpop.f32.mrf.mxu0  ;;  %1310 = vtanh.f32 %v912_v49  ;;  %v894_v0 = vmul.f32 0.5, %v1293_v28  ;;  %v1295_v54 = vpop.eup %1294 }
 0x13b   : > { %v669_v29 = vadd.f32 %v668_v33, %v517_v20  ;;  %v826_v51 = vadd.f32 %v1868_v55, %v665_v19  ;;  %v914_v53 = vmul.f32 0.5, %v824_v22  ;;  %1312 = vtanh.f32 %v883_v1 }
 0x13c   : > { %v1888_v46 = vpop.f32.mrf.mxu0  ;;  %1314 = vtanh.f32 %v913_v30  ;;  %v1930_v13 = vadd.f32 0.5, %v894_v0  ;;  %v895_v18 = vmul.f32 0.5, %v1295_v54  ;;  %v980_v0 = vld [vmem:[%s1949_s25] sm:$0xff]  ;;  %v981_v54 = vld [vmem:[%s1949_s25 + $0x8] sm:$0xff] }
 0x13d   : > { %v671_v50 = vadd.f32 %v1888_v46, %v517_v20  ;;  %v830_v33 = vadd.f32 %v1870_v58, %v669_v29  ;;  %v915_v2 = vmul.f32 0.5, %v826_v51  ;;  %v867_v20 = vpop.f32.mrf.mxu1 }
 0x13e   : > { %v1891_v38 = vpop.f32.mrf.mxu0 }
 0x13f   : > { %v675_v5 = vadd.f32 %v1891_v38, %v522_v34  ;;  %v1297_v46 = vpop.eup %1296  ;;  %v832_v58 = vadd.f32 %v1872_v60, %v671_v50  ;;  %v940_v12 = vmul.f32 0.5, %v830_v33 }
 0x140   : > { %v1898_v7 = vpop.f32.mrf.mxu0  ;;  %v924_v60 = vmul.f32 0.5, %v1297_v46 }
 0x141   : > { %v677_v38 = vadd.f32 %v1898_v7, %v522_v34  ;;  %v836_v15 = vadd.f32 %v1874_v63, %v675_v5  ;;  %v941_v21 = vmul.f32 0.5, %v832_v58 }
 0x142   : > { %v1902_v11 = vpop.f32.mrf.mxu0 }
 0x143   : > { %v838_v63 = vadd.f32 %v1876_v3, %v677_v38  ;;  %v942_v30 = vmul.f32 0.5, %v836_v15  ;;  %v532_v3 = vpop.permute.xlu1 %531 }
 0x144   : > { %v1906_v17 = vpop.f32.mrf.mxu0 }
 0x145   : > { %v683_v51 = vadd.f32 %v1906_v17, %v527_v14  ;;  %v871_v17 = vpop.f32.mrf.mxu1  ;;  %v943_v33 = vmul.f32 0.5, %v838_v63 }
 0x146   : > { %v1912_v47 = vpop.f32.mrf.mxu0 }
 0x147   : > { %v687_v48 = vadd.f32 %v1912_v47, %v532_v3  ;;  %v844_v5 = vadd.f32 %v1880_v16, %v683_v51  ;;  %v873_v46 = vpop.f32.mrf.mxu1 }
 0x148   : > { %v1915_v26 = vpop.f32.mrf.mxu0 }
 0x14a   : > { %v692_v27 = vpop.f32.mrf.mxu0 }
 0x14b   : > { %v693_v36 = vadd.f32 %v692_v27, %v1884_v32 }
 0x14c   : > { %v694_v52 = vpop.f32.mrf.mxu0 }
 0x14d   : > { %v854_v56 = vadd.f32 %v853_v43, %v693_v36  ;;  %v695_v55 = vadd.f32 %v694_v52, %v1884_v32  ;;  %v1299_v43 = vpop.eup %1298  ;;  %v932_v36 = vadd.f32 0.5, %v924_v60 }
 0x14e   : > { %v698_v6 = vpop.f32.mrf.mxu0  ;;  %v1301_v41 = vpop.eup %1300  ;;  %v925_v7 = vmul.f32 0.5, %v1299_v43 }
 0x14f   : > { %1316 = vtanh.f32 %v854_v56  ;;  %v856_v57 = vadd.f32 %v855_v39, %v695_v55  ;;  %v699_v59 = vadd.f32 %v698_v6, %v1893_v4  ;;  %v1303_v22 = vpop.eup %1302  ;;  %v926_v29 = vmul.f32 0.5, %v1301_v41 }
 0x150   : > { %1318 = vtanh.f32 %v914_v53  ;;  %v700_v32 = vpop.f32.mrf.mxu0  ;;  %v1305_v1 = vpop.eup %1304  ;;  %v933_v52 = vadd.f32 0.5, %v925_v7  ;;  %v896_v6 = vmul.f32 0.5, %v1303_v22 }
 0x151   : > { %1320 = vtanh.f32 %v856_v57  ;;  %v860_v39 = vadd.f32 %v859_v23, %v699_v59  ;;  %v701_v40 = vadd.f32 %v700_v32, %v1893_v4  ;;  %v681_v23 = vadd.f32 %v1902_v11, %v527_v14  ;;  %v1940_v28 = vpop.eup %1306  ;;  %v982_v57 = vld [vmem:[%s1949_s25 + $0x10] sm:$0xff] }
 0x152   : > { %1322 = vtanh.f32 %v915_v2  ;;  %v704_v61 = vpop.f32.mrf.mxu0  ;;  %v1942_v11 = vadd.f32 0.5, %v895_v18  ;;  %v1309_v34 = vpop.eup %1308  ;;  %v934_v2 = vadd.f32 0.5, %v926_v29  ;;  %v988_v14 = vmul.f32 %v980_v0, %v932_v36 }
 0x153   : > { %1324 = vtanh.f32 %v860_v39  ;;  %v705_v19 = vadd.f32 %v704_v61, %v1896_v44  ;;  %v862_v24 = vadd.f32 %v861_v37, %v701_v40  ;;  %v842_v37 = vadd.f32 %v1878_v9, %v681_v23  ;;  %v1311_v50 = vpop.eup %1310  ;;  %v983_v23 = vld [vmem:[%s1949_s25 + $0x18] sm:$0xff] }
 0x154   : > { %v706_v49 = vpop.f32.mrf.mxu0  ;;  %1326 = vtanh.f32 %v940_v12  ;;  %v1955_v55 = vpop.eup %1312  ;;  %v927_v59 = vmul.f32 0.5, %v1309_v34  ;;  %v928_v32 = vmul.f32 0.5, %v1311_v50  ;;  %v848_v12 = vadd.f32 %v1882_v25, %v687_v48  ;;  %v986_v50 = vld [vmem:[%s1949_s25 + $0x30] sm:$0xff] }
 0x155   : > { %v866_v4 = vadd.f32 %v865_v45, %v705_v19  ;;  %v707_v42 = vadd.f32 %v706_v49, %v1896_v44  ;;  %1328 = vtanh.f32 %v862_v24  ;;  %v1315_v47 = vpop.eup %1314  ;;  %v689_v45 = vadd.f32 %v1915_v26, %v532_v3 }
 0x156   : > { %v710_v27 = vpop.f32.mrf.mxu0  ;;  %v944_v43 = vmul.f32 0.5, %v842_v37  ;;  %v989_v26 = vmul.f32 %v981_v54, %v933_v52  ;;  %v990_v40 = vmul.f32 %v982_v57, %v934_v2  ;;  %v945_v61 = vmul.f32 0.5, %v844_v5 }
 0x157   : > { %1330 = vtanh.f32 %v866_v4  ;;  %v868_v44 = vadd.f32 %v867_v20, %v707_v42  ;;  %v711_v31 = vadd.f32 %v710_v27, %v1909_v8  ;;  %v929_v18 = vmul.f32 0.5, %v1315_v47  ;;  %v984_v42 = vld [vmem:[%s1949_s25 + $0x20] sm:$0xff] }
 0x158   : > { %1332 = vtanh.f32 %v941_v21  ;;  %v712_v53 = vpop.f32.mrf.mxu0  ;;  %v850_v60 = vadd.f32 %v1886_v35, %v689_v45  ;;  %v935_v7 = vadd.f32 0.5, %v927_v59  ;;  %v936_v21 = vadd.f32 0.5, %v928_v32 }
 0x159   : > { %1334 = vtanh.f32 %v868_v44  ;;  %v872_v56 = vadd.f32 %v871_v17, %v711_v31  ;;  %v713_v9 = vadd.f32 %v712_v53, %v1909_v8  ;;  %v897_v8 = vmul.f32 0.5, %v1305_v1  ;;  %v985_v44 = vld [vmem:[%s1949_s25 + $0x28] sm:$0xff] }
 0x15a   : > { %1336 = vtanh.f32 %v942_v30  ;;  %v898_v4 = vmul.f32 0.5, %v1940_v28  ;;  %v937_v29 = vadd.f32 0.5, %v929_v18  ;;  %v947_v30 = vmul.f32 0.5, %v850_v60 }
 0x15b   : > { %1338 = vtanh.f32 %v872_v56  ;;  %v874_v16 = vadd.f32 %v873_v46, %v713_v9  ;;  %v905_v63 = vadd.f32 0.5, %v897_v8  ;;  %v991_v3 = vmul.f32 %v983_v23, %v935_v7 }
 0x15c   : > { %v1317_v58 = vpop.eup %1316  ;;  %1340 = vtanh.f32 %v943_v33  ;;  %v992_v34 = vmul.f32 %v984_v42, %v936_v21  ;;  %v906_v48 = vadd.f32 0.5, %v898_v4  ;;  %v899_v53 = vmul.f32 0.5, %v1955_v55 }
 0x15d   : > { %v1319_v38 = vpop.eup %1318  ;;  %v996_v39 = vmul.f32 %v1317_v58, %v1924_v62  ;;  %1342 = vtanh.f32 %v874_v16  ;;  %v946_v62 = vmul.f32 0.5, %v848_v12  ;;  %v993_v56 = vmul.f32 %v985_v44, %v937_v29 }
 0x15e   : > { %v1321_v15 = vpop.eup %1320  ;;  %1344 = vtanh.f32 %v944_v43  ;;  %v930_v24 = vmul.f32 0.5, %v1319_v38  ;;  %v907_v59 = vadd.f32 0.5, %v899_v53 }
 0x15f   : > { %v1323_v41 = vpop.eup %1322  ;;  %v1004_v19 = vadd.f32 %v996_v39, %v988_v14  ;;  %v997_v25 = vmul.f32 %v1321_v15, %v1926_v10  ;;  %v904_v10 = vadd.f32 0.5, %v896_v6  ;;  %v987_v6 = vld [vmem:[%s1949_s25 + $0x38] sm:$0xff]  ;;  %s1374_s25 = scalar_lea.vmem %s1373_s24, 2048 }
 0x160   : > { %v1325_v20 = vpop.eup %1324  ;;  %v931_v31 = vmul.f32 0.5, %v1323_v41  ;;  %v938_v28 = vadd.f32 0.5, %v930_v24  ;;  %p1376_p2 = scmp.lt.s32.totalorder %s1374_s25, %s1368_s16 }
 0x161   : > { %1346 = vtanh.f32 %v1004_v19  ;;  %1036 = vst [vmem:[%s1973_s7] sm:$0xff] %v1004_v19  ;;  %v1005_v49 = vadd.f32 %v997_v25, %v989_v26  ;;  %v998_v35 = vmul.f32 %v1325_v20, %v1930_v13  ;;  %v1327_v22 = vpop.eup %1326 }
 0x162   : > { %1348 = vtanh.f32 %v945_v61  ;;  %v1329_v1 = vpop.eup %1328  ;;  %v939_v5 = vadd.f32 0.5, %v931_v31  ;;  %v956_v9 = vmul.f32 0.5, %v1327_v22  ;;  %v994_v47 = vmul.f32 %v986_v50, %v938_v28  ;;  %p1377_p3 = por %p1376_p2, %p1375_p1 }
 0x163   : > { %1350 = vtanh.f32 %v1005_v49  ;;  %1037 = vst [vmem:[%s1973_s7 + $0x8] sm:$0xff] %v1005_v49  ;;  %v1006_v51 = vadd.f32 %v998_v35, %v990_v40  ;;  %v999_v13 = vmul.f32 %v1329_v1, %v1942_v11 }
 0x164   : > { %v1331_v27 = vpop.eup %1330  ;;  %1352 = vtanh.f32 %v946_v62  ;;  %v995_v32 = vmul.f32 %v987_v6, %v939_v5  ;;  %v964_v16 = vadd.f32 0.5, %v956_v9  ;;  %p1378_p5 = pnand %p1377_p3, %p1371_p0 }
 0x165   : > { %v1333_v17 = vpop.eup %1332  ;;  %1354 = vtanh.f32 %v1006_v51  ;;  %1038 = vst [vmem:[%s1973_s7 + $0x10] sm:$0xff] %v1006_v51  ;;  %v1000_v36 = vmul.f32 %v1331_v27, %v904_v10  ;;  %v1007_v52 = vadd.f32 %v999_v13, %v991_v3 }
 0x166   : > { %v1335_v37 = vpop.eup %1334  ;;  %1356 = vtanh.f32 %v947_v30  ;;  %v957_v46 = vmul.f32 0.5, %v1333_v17 }
 0x167   : > { %v1337_v33 = vpop.eup %1336  ;;  %v1008_v11 = vadd.f32 %v1000_v36, %v992_v34  ;;  %v1001_v0 = vmul.f32 %v1335_v37, %v905_v63  ;;  %1358 = vtanh.f32 %v1007_v52  ;;  %1039 = vst [vmem:[%s1973_s7 + $0x18] sm:$0xff] %v1007_v52 }
 0x168   : > { %v1339_v2 = vpop.eup %1338  ;;  %v958_v38 = vmul.f32 0.5, %v1337_v33  ;;  %v965_v15 = vadd.f32 0.5, %v957_v46 }
 0x169   : > { %1360 = vtanh.f32 %v1008_v11  ;;  %1040 = vst [vmem:[%s1973_s7 + $0x20] sm:$0xff] %v1008_v11  ;;  %v1009_v55 = vadd.f32 %v1001_v0, %v993_v56  ;;  %v1002_v54 = vmul.f32 %v1339_v2, %v906_v48  ;;  %v1341_v57 = vpop.eup %1340 }
 0x16a   : > { %v1343_v45 = vpop.eup %1342  ;;  %v959_v61 = vmul.f32 0.5, %v1341_v57  ;;  %v966_v18 = vadd.f32 0.5, %v958_v38 }
 0x16b   : > { %1362 = vtanh.f32 %v1009_v55  ;;  %1041 = vst [vmem:[%s1973_s7 + $0x28] sm:$0xff] %v1009_v55  ;;  %v1010_v58 = vadd.f32 %v1002_v54, %v994_v47  ;;  %v1003_v43 = vmul.f32 %v1343_v45, %v907_v59  ;;  %v1345_v12 = vpop.eup %1344 }
 0x16c   : > { %v960_v60 = vmul.f32 0.5, %v1345_v12 }
 0x16d   : > { %1364 = vtanh.f32 %v1010_v58  ;;  %1042 = vst [vmem:[%s1973_s7 + $0x30] sm:$0xff] %v1010_v58  ;;  %v1011_v14 = vadd.f32 %v1003_v43, %v995_v32 }
 0x16e   : > { %v1347_v8 = vpop.eup %1346 }
 0x16f   : > { %v1349_v39 = vpop.eup %1348  ;;  %v1020_v26 = vmul.f32 %v1347_v8, %v964_v16  ;;  %1366 = vtanh.f32 %v1011_v14  ;;  %1043 = vst [vmem:[%s1973_s7 + $0x38] sm:$0xff] %v1011_v14 }
 0x170   : > { %v1351_v40 = vpop.eup %1350 }
 0x171   : > { %v1353_v41 = vpop.eup %1352  ;;  %1028 = vst [vmem:[%s1996_s12] sm:$0xff] %v1020_v26  ;;  %v1021_v19 = vmul.f32 %v1351_v40, %v965_v15 }
 0x172   : > { %1381 = shalt.err (!%p1378_p5)
}
 0x173   : > { %s1382_s27 = scalar_lea.hbm %s2002_s15, 1024  ;;  %s1386_s8 = scalar_lea.hbm %s2067_s5, 2048 }
 0x174   : > { %p1383_p6 = scmp.ne.s32.totalorder %s2002_s15, %s1382_s27  ;;  %p1387_p10 = scmp.lt.s32.totalorder %s2002_s15, %s2067_s5 }
 0x175   : > { %p1388_p11 = scmp.lt.s32.totalorder %s1386_s8, %s1382_s27 }
 0x176   : > { %p1384_p7 = pnand %p1383_p6, %p1521_p4 }
 0x177   : > { %p1389_p12 = por %p1388_p11, %p1387_p10 }
 0x178   : > { %p1385_p9 = pneg %p1384_p7 }
 0x17a   : > { %p1390_p13 = pnand %p1389_p12, %p1385_p9 }
 0x17c   : > { %1393 = shalt.err (!%p1390_p13)
}
 0x17d   : > { %s1449_s21 = smov 256   ;;  %s1450_s14 = smov 16   ;;  %v1355_v25 = vpop.eup %1354  ;;  %v961_v20 = vmul.f32 0.5, %v1349_v39  ;;  %1029 = vst [vmem:[%s1996_s12 + $0x8] sm:$0xff] %v1021_v19  ;;  %v967_v62 = vadd.f32 0.5, %v959_v61  ;;  %v968_v24 = vadd.f32 0.5, %v960_v60 }
 0x17e   : > { %1227 = dma.vmem_to_hbm [thread:$0]  (%p1521_p4), %s2004_s10, 1024, %s2002_s15, %s2010_s9, %s1449_s21, %s1449_s21, %s1450_s14   ;;  %v1022_v7 = vmul.f32 %v1355_v25, %v966_v18  ;;  %v1357_v21 = vpop.eup %1356  ;;  %v962_v49 = vmul.f32 0.5, %v1353_v41 }
 0x17f   : > { %v1359_v23 = vpop.eup %1358  ;;  %v969_v10 = vadd.f32 0.5, %v961_v20  ;;  %v963_v42 = vmul.f32 0.5, %v1357_v21 }
 0x180   : > { %1030 = vst [vmem:[%s1996_s12 + $0x10] sm:$0xff] %v1022_v7  ;;  %v1361_v35 = vpop.eup %1360  ;;  %v1023_v22 = vmul.f32 %v1359_v23, %v967_v62  ;;  %v970_v1 = vadd.f32 0.5, %v962_v49 }
 0x181   : > { %v1024_v63 = vmul.f32 %v1361_v35, %v968_v24  ;;  %v1363_v4 = vpop.eup %1362  ;;  %v971_v27 = vadd.f32 0.5, %v963_v42 }
 0x182   : > { %1031 = vst [vmem:[%s1996_s12 + $0x18] sm:$0xff] %v1023_v22  ;;  %v1025_v29 = vmul.f32 %v1363_v4, %v969_v10  ;;  %v1365_v30 = vpop.eup %1364 }
 0x183   : > { %1032 = vst [vmem:[%s1996_s12 + $0x20] sm:$0xff] %v1024_v63  ;;  %v1026_v51 = vmul.f32 %v1365_v30, %v970_v1  ;;  %v1367_v3 = vpop.eup %1366 }
 0x184   : > { %1033 = vst [vmem:[%s1996_s12 + $0x28] sm:$0xff] %v1025_v29  ;;  %v1027_v44 = vmul.f32 %v1367_v3, %v971_v27 }
 0x185   : > { %1034 = vst [vmem:[%s1996_s12 + $0x30] sm:$0xff] %v1026_v51 }
 0x186   : > { %1035 = vst [vmem:[%s1996_s12 + $0x38] sm:$0xff] %v1027_v44 }
 0x187 PF: > { %p1233_p4 = scmp.ge.s32.totalorder %s1444_s23, 2  ;;  %s1100_s28 = sand.u32 1, %s1424_s18  }
 0x188   : > { %s1101_s10 = scalar_lea.sflag [#allocation3], %s1100_s28 }
 0x189   : > { %p1230_p0 = pnand %p1233_p4, %p1528_p8 }
 0x18b   : > { %p1231_p1 = pneg %p1230_p0 }
 0x18d   : > { %1419 = dma.done.wait (%p1231_p1), %s1101_s10, 1024  }
 0x18e   : > { %1421 = vsyncadd (%p1231_p1), %s1101_s10, 4294966272  ;;  %s19_s23 = sadd.s32 1, %s1444_s23   ;;  %s2070_s18 = smov %s1428_s19 }
 0x18f   : > { %p16_p2 = scmp.ge.s32.totalorder %s19_s23, 4   ;;  %s2071_s19 = smov %s1432_s20 }
 0x190   : > { %s2072_s20 = smov %s1534_s6  ;;  %s2073_s21 = smov %s1440_s22 }
 0x191   : > { %s2074_s22 = smov %s2076_s26  ;;  %18 = sbr.rel (!%p16_p2) target bundleno = 4 (0x4), region = 86 }
 0x196   :  { %1106 = vsyncpa [#allocation3], 1 }
 0x197   :  { %1108 = vsyncpa [#allocation3 + $0x1], 1 }

</bundles_post_ra>
